<compile_context>
chip_gen: v5e
topology: v5e:2x2
jax: 0.10.0
libtpu: 0.0.40
codegen_flags: <defaults>
</compile_context>

<pallas_src>
import functools

import jax
import jax.numpy as jnp
from jax.experimental import pallas as pl
from jax.experimental.pallas import tpu as pltpu

_ATT_PAD = 128  # lane-dense column count for the stacked attention matmul


def _leaky_relu(x, slope=0.2):
    return jnp.where(x > 0, x, slope * x)


# ----------------------------- fused Pallas kernel --------------------------


def gat_fused_kernel(*refs, cfgs):
    """Fused forward: fc + relu followed by all GATConv layers.

    refs layout:
      [x, adj, fc_w, fc_b, (w, att_mat, bias) * n_layers, o_ref, act_scratch]
    cfgs: tuple of (heads, out_ch) per conv layer (concat=True for all).
    """
    n_layers = len(cfgs)
    x_ref, adj_ref, fc_w_ref, fc_b_ref = refs[:4]
    layer_refs = refs[4:4 + 3 * n_layers]
    o_ref = refs[4 + 3 * n_layers]
    act_ref = refs[4 + 3 * n_layers + 1]

    neg = jnp.float32(-1e30)
    # Additive mask computed once, shared by all layers and heads.
    adj_bias = jnp.where(adj_ref[...] > 0, jnp.float32(0.0), neg)

    # Input projection + ReLU (bf16 MXU operands, f32 accumulation).
    h0 = jnp.dot(x_ref[...].astype(jnp.bfloat16),
                 fc_w_ref[...].astype(jnp.bfloat16),
                 preferred_element_type=jnp.float32)
    act = jnp.maximum(h0 + fc_b_ref[...], 0.0)                  # [N, hidden]

    for li, (heads, C) in enumerate(cfgs):
        w_ref = layer_refs[3 * li]
        att_ref = layer_refs[3 * li + 1]
        b_ref = layer_refs[3 * li + 2]
        is_last = li == n_layers - 1

        hmat = jnp.dot(act.astype(jnp.bfloat16),
                       w_ref[...].astype(jnp.bfloat16),
                       preferred_element_type=jnp.float32)      # [N, heads*C]
        hmat_b = hmat.astype(jnp.bfloat16)

        # All e_src / e_dst for every head in a single MXU matmul.
        # att_mat is block-structured and zero-padded to 128 lanes:
        # column 2*hd holds att_src[hd], column 2*hd+1 holds att_dst[hd].
        e = jnp.dot(hmat_b, att_ref[...].astype(jnp.bfloat16),
                    preferred_element_type=jnp.float32)         # [N, 128]

        for hd in range(heads):
            e_src = e[:, 2 * hd:2 * hd + 1]                     # [N, 1]
            e_dst = e[:, 2 * hd + 1:2 * hd + 2]                 # [N, 1]
            # score[i, j] = leaky_relu(e_dst[i] + e_src[j]) (+ mask bias)
            score = _leaky_relu(e_dst + jnp.transpose(e_src)) + adj_bias
            m = jnp.max(score, axis=-1, keepdims=True)
            p = jnp.exp(score - m)            # masked entries underflow to 0
            denom = jnp.maximum(jnp.sum(p, axis=-1, keepdims=True),
                                jnp.float32(1e-20))
            alpha = p * pl.reciprocal(denom, approx=True)
            out_h = jnp.dot(alpha.astype(jnp.bfloat16),
                            hmat_b[:, hd * C:(hd + 1) * C],
                            preferred_element_type=jnp.float32)  # [N, C]
            out_h = out_h + b_ref[:, hd * C:(hd + 1) * C]
            if is_last:
                o_ref[:, hd * C:(hd + 1) * C] = out_h
            else:
                act_ref[:, hd * C:(hd + 1) * C] = out_h

        if not is_last:
            act = act_ref[:, :heads * C]


# ------------------------------ host wrapper ---------------------------------


def gat_forward(x, adj, fc_params, conv_params, conv_cfgs):
    fc_w, fc_b = fc_params
    inputs = [x, adj, fc_w, fc_b]
    for (w, att_mat, bias) in conv_params:
        inputs += [w, att_mat, bias]

    N = x.shape[0]
    heads_last, c_last = conv_cfgs[-1]
    out_dim = heads_last * c_last
    act_width = max([h * c for (h, c) in conv_cfgs[:-1]] + [fc_w.shape[1]])

    kernel = functools.partial(gat_fused_kernel, cfgs=tuple(conv_cfgs))
    return pl.pallas_call(
        kernel,
        out_shape=jax.ShapeDtypeStruct((N, out_dim), jnp.float32),
        grid=(1,),
        in_specs=[pl.BlockSpec(a.shape, lambda i: (0, 0)) for a in inputs],
        out_specs=pl.BlockSpec((N, out_dim), lambda i: (0, 0)),
        scratch_shapes=[pltpu.VMEM((N, act_width), jnp.float32)],
        compiler_params=pltpu.CompilerParams(
            dimension_semantics=("arbitrary",)),
    )(*inputs)


# ------------------------------ parameter init ------------------------------


def init_gatconv_params(key, in_ch, out_ch, heads):
    k1, k2, k3 = jax.random.split(key, 3)
    scale = 1.0 / jnp.sqrt(jnp.float32(in_ch))
    w = jax.random.normal(k1, (in_ch, heads * out_ch), jnp.float32) * scale
    att_src = jax.random.normal(k2, (1, heads * out_ch), jnp.float32) * 0.1
    att_dst = jax.random.normal(k3, (1, heads * out_ch), jnp.float32) * 0.1
    bias = jnp.zeros((1, heads * out_ch), jnp.float32)  # concat=True bias

    # Block-structured attention matrix, zero-padded to 128 lanes so every
    # head's e_src / e_dst come out of one lane-dense MXU matmul.
    att_mat = jnp.zeros((heads * out_ch, _ATT_PAD), jnp.float32)
    for hd in range(heads):
        rows = slice(hd * out_ch, (hd + 1) * out_ch)
        att_mat = att_mat.at[rows, 2 * hd].set(att_src[0, rows])
        att_mat = att_mat.at[rows, 2 * hd + 1].set(att_dst[0, rows])
    return (w, att_mat, bias)


def init_gat_params(key, hidden_dim, node_dim, num_layers):
    keys = jax.random.split(key, num_layers + 1)
    scale = 1.0 / jnp.sqrt(jnp.float32(node_dim))
    fc_w = jax.random.normal(keys[0], (node_dim, hidden_dim), jnp.float32) * scale
    fc_b = jnp.zeros((1, hidden_dim), jnp.float32)

    conv_params = []
    conv_cfgs = []
    # layer 0: GATConv(hidden, hidden, heads=2)
    conv_params.append(init_gatconv_params(keys[1], hidden_dim, hidden_dim, 2))
    conv_cfgs.append((2, hidden_dim))
    # middle layers: GATConv(hidden*2, hidden, heads=2)
    for i in range(num_layers - 2):
        conv_params.append(
            init_gatconv_params(keys[2 + i], hidden_dim * 2, hidden_dim, 2))
        conv_cfgs.append((2, hidden_dim))
    # last layer: GATConv(hidden*2, hidden)  (heads=1)
    conv_params.append(
        init_gatconv_params(keys[num_layers], hidden_dim * 2, hidden_dim, 1))
    conv_cfgs.append((1, hidden_dim))
    return (fc_w, fc_b), conv_params, conv_cfgs


# ----------------------------------- main -----------------------------------

if __name__ == "__main__":
    hidden_dim = 32
    node_dim = 16
    num_layers = 6
    N = 16  # number of graph nodes

    key = jax.random.PRNGKey(0)
    k_x, k_p = jax.random.split(key)

    # node features
    x = jax.random.normal(k_x, (N, node_dim), jnp.float32)

    # deterministic edge_index: bidirectional ring + skip-2 edges
    # TODO(synk): PyG's sparse edge_index scatter-softmax is represented here
    # as a dense [N, N] adjacency mask (fine for small molecular graphs).
    src, dst = [], []
    for i in range(N):
        src += [i, (i + 1) % N, i]
        dst += [(i + 1) % N, i, (i + 2) % N]
    adj = jnp.zeros((N, N), jnp.float32)
    adj = adj.at[jnp.array(dst), jnp.array(src)].set(1.0)
    adj = adj.at[jnp.arange(N), jnp.arange(N)].set(1.0)  # PyG add_self_loops

    fc_params, conv_params, conv_cfgs = init_gat_params(
        k_p, hidden_dim, node_dim, num_layers)

    out = gat_forward(x, adj, fc_params, conv_params, conv_cfgs)
    out = jax.block_until_ready(out)

    assert out.shape == (N, hidden_dim), out.shape
    assert bool(jnp.all(jnp.isfinite(out)))
    print("KERNEL_OK")
</pallas_src>

<mosaic_0001>
module attributes {stable_mosaic.version = 11 : i64} {
  func.func @gat_fused_kernel(%arg0: i32, %arg1: memref<16x16xf32, #tpu.memory_space<vmem>>, %arg2: memref<16x16xf32, #tpu.memory_space<vmem>>, %arg3: memref<16x32xf32, #tpu.memory_space<vmem>>, %arg4: memref<1x32xf32, #tpu.memory_space<vmem>>, %arg5: memref<32x64xf32, #tpu.memory_space<vmem>>, %arg6: memref<64x128xf32, #tpu.memory_space<vmem>>, %arg7: memref<1x64xf32, #tpu.memory_space<vmem>>, %arg8: memref<64x64xf32, #tpu.memory_space<vmem>>, %arg9: memref<64x128xf32, #tpu.memory_space<vmem>>, %arg10: memref<1x64xf32, #tpu.memory_space<vmem>>, %arg11: memref<64x64xf32, #tpu.memory_space<vmem>>, %arg12: memref<64x128xf32, #tpu.memory_space<vmem>>, %arg13: memref<1x64xf32, #tpu.memory_space<vmem>>, %arg14: memref<64x64xf32, #tpu.memory_space<vmem>>, %arg15: memref<64x128xf32, #tpu.memory_space<vmem>>, %arg16: memref<1x64xf32, #tpu.memory_space<vmem>>, %arg17: memref<64x64xf32, #tpu.memory_space<vmem>>, %arg18: memref<64x128xf32, #tpu.memory_space<vmem>>, %arg19: memref<1x64xf32, #tpu.memory_space<vmem>>, %arg20: memref<64x32xf32, #tpu.memory_space<vmem>>, %arg21: memref<32x128xf32, #tpu.memory_space<vmem>>, %arg22: memref<1x32xf32, #tpu.memory_space<vmem>>, %arg23: memref<16x32xf32, #tpu.memory_space<vmem>>, %arg24: memref<16x64xf32, #tpu.memory_space<vmem>>) attributes {dimension_semantics = [#tpu.dimension_semantics<arbitrary>], iteration_bounds = array<i64: 1>, scalar_prefetch = 0 : i64, scratch_operands = 1 : i64, tpu.core_type = #tpu.core_type<tc>, window_params = [{pipeline_mode = #tpu.pipeline_mode<synchronous>, transform_indices = @transform_0, window_bounds = array<i64: 16, 16>}, {pipeline_mode = #tpu.pipeline_mode<synchronous>, transform_indices = @transform_1, window_bounds = array<i64: 16, 16>}, {pipeline_mode = #tpu.pipeline_mode<synchronous>, transform_indices = @transform_2, window_bounds = array<i64: 16, 32>}, {pipeline_mode = #tpu.pipeline_mode<synchronous>, transform_indices = @transform_3, window_bounds = array<i64: 1, 32>}, {pipeline_mode = #tpu.pipeline_mode<synchronous>, transform_indices = @transform_4, window_bounds = array<i64: 32, 64>}, {pipeline_mode = #tpu.pipeline_mode<synchronous>, transform_indices = @transform_5, window_bounds = array<i64: 64, 128>}, {pipeline_mode = #tpu.pipeline_mode<synchronous>, transform_indices = @transform_6, window_bounds = array<i64: 1, 64>}, {pipeline_mode = #tpu.pipeline_mode<synchronous>, transform_indices = @transform_7, window_bounds = array<i64: 64, 64>}, {pipeline_mode = #tpu.pipeline_mode<synchronous>, transform_indices = @transform_8, window_bounds = array<i64: 64, 128>}, {pipeline_mode = #tpu.pipeline_mode<synchronous>, transform_indices = @transform_9, window_bounds = array<i64: 1, 64>}, {pipeline_mode = #tpu.pipeline_mode<synchronous>, transform_indices = @transform_10, window_bounds = array<i64: 64, 64>}, {pipeline_mode = #tpu.pipeline_mode<synchronous>, transform_indices = @transform_11, window_bounds = array<i64: 64, 128>}, {pipeline_mode = #tpu.pipeline_mode<synchronous>, transform_indices = @transform_12, window_bounds = array<i64: 1, 64>}, {pipeline_mode = #tpu.pipeline_mode<synchronous>, transform_indices = @transform_13, window_bounds = array<i64: 64, 64>}, {pipeline_mode = #tpu.pipeline_mode<synchronous>, transform_indices = @transform_14, window_bounds = array<i64: 64, 128>}, {pipeline_mode = #tpu.pipeline_mode<synchronous>, transform_indices = @transform_15, window_bounds = array<i64: 1, 64>}, {pipeline_mode = #tpu.pipeline_mode<synchronous>, transform_indices = @transform_16, window_bounds = array<i64: 64, 64>}, {pipeline_mode = #tpu.pipeline_mode<synchronous>, transform_indices = @transform_17, window_bounds = array<i64: 64, 128>}, {pipeline_mode = #tpu.pipeline_mode<synchronous>, transform_indices = @transform_18, window_bounds = array<i64: 1, 64>}, {pipeline_mode = #tpu.pipeline_mode<synchronous>, transform_indices = @transform_19, window_bounds = array<i64: 64, 32>}, {pipeline_mode = #tpu.pipeline_mode<synchronous>, transform_indices = @transform_20, window_bounds = array<i64: 32, 128>}, {pipeline_mode = #tpu.pipeline_mode<synchronous>, transform_indices = @transform_21, window_bounds = array<i64: 1, 32>}, {pipeline_mode = #tpu.pipeline_mode<synchronous>, transform_indices = @transform_22, window_bounds = array<i64: 16, 32>}]} {
    %c0 = arith.constant 0 : index
    %c0_0 = arith.constant 0 : index
    %0 = vector.load %arg2[%c0, %c0_0] : memref<16x16xf32, #tpu.memory_space<vmem>>, vector<16x16xf32>
    %cst = arith.constant 0.000000e+00 : f32
    %1 = vector.broadcast %cst : f32 to vector<16x16xf32>
    %2 = arith.cmpf ogt, %0, %1 : vector<16x16xf32>
    %cst_1 = arith.constant 0.000000e+00 : f32
    %cst_2 = arith.constant -1.000000e+30 : f32
    %3 = vector.broadcast %cst_1 : f32 to vector<16x16xf32>
    %4 = vector.broadcast %cst_2 : f32 to vector<16x16xf32>
    %5 = arith.select %2, %3, %4 : vector<16x16xi1>, vector<16x16xf32>
    %c0_3 = arith.constant 0 : index
    %c0_4 = arith.constant 0 : index
    %6 = vector.load %arg1[%c0_3, %c0_4] : memref<16x16xf32, #tpu.memory_space<vmem>>, vector<16x16xf32>
    %7 = arith.truncf %6 : vector<16x16xf32> to vector<16x16xbf16>
    %c0_5 = arith.constant 0 : index
    %c0_6 = arith.constant 0 : index
    %8 = vector.load %arg3[%c0_5, %c0_6] : memref<16x32xf32, #tpu.memory_space<vmem>>, vector<16x32xf32>
    %9 = arith.truncf %8 : vector<16x32xf32> to vector<16x32xbf16>
    %cst_7 = arith.constant dense<0.000000e+00> : vector<16x32xf32>
    %10 = tpu.matmul %7, %9, %cst_7 {dimension_numbers = #tpu.dot_dimension_numbers<[1], [0], [0], [1], [0, 0, 1, 1], [], []>} : vector<16x16xbf16>, vector<16x32xbf16>, vector<16x32xf32> -> vector<16x32xf32>
    %c0_8 = arith.constant 0 : index
    %c0_9 = arith.constant 0 : index
    %11 = vector.load %arg4[%c0_8, %c0_9] : memref<1x32xf32, #tpu.memory_space<vmem>>, vector<1x32xf32>
    %12 = vector.broadcast %11 : vector<1x32xf32> to vector<16x32xf32>
    %13 = arith.addf %10, %12 : vector<16x32xf32>
    %cst_10 = arith.constant 0.000000e+00 : f32
    %14 = vector.broadcast %cst_10 : f32 to vector<16x32xf32>
    %15 = arith.maximumf %13, %14 : vector<16x32xf32>
    %16 = arith.truncf %15 : vector<16x32xf32> to vector<16x32xbf16>
    %c0_11 = arith.constant 0 : index
    %c0_12 = arith.constant 0 : index
    %17 = vector.load %arg5[%c0_11, %c0_12] : memref<32x64xf32, #tpu.memory_space<vmem>>, vector<32x64xf32>
    %18 = arith.truncf %17 : vector<32x64xf32> to vector<32x64xbf16>
    %cst_13 = arith.constant dense<0.000000e+00> : vector<16x64xf32>
    %19 = tpu.matmul %16, %18, %cst_13 {dimension_numbers = #tpu.dot_dimension_numbers<[1], [0], [0], [1], [0, 0, 1, 1], [], []>} : vector<16x32xbf16>, vector<32x64xbf16>, vector<16x64xf32> -> vector<16x64xf32>
    %20 = arith.truncf %19 : vector<16x64xf32> to vector<16x64xbf16>
    %c0_14 = arith.constant 0 : index
    %c0_15 = arith.constant 0 : index
    %21 = vector.load %arg6[%c0_14, %c0_15] : memref<64x128xf32, #tpu.memory_space<vmem>>, vector<64x128xf32>
    %22 = arith.truncf %21 : vector<64x128xf32> to vector<64x128xbf16>
    %cst_16 = arith.constant dense<0.000000e+00> : vector<16x128xf32>
    %23 = tpu.matmul %20, %22, %cst_16 {dimension_numbers = #tpu.dot_dimension_numbers<[1], [0], [0], [1], [0, 0, 1, 1], [], []>} : vector<16x64xbf16>, vector<64x128xbf16>, vector<16x128xf32> -> vector<16x128xf32>
    %24 = vector.extract_strided_slice %23 {offsets = [0, 0], sizes = [16, 1], strides = [1, 1]} : vector<16x128xf32> to vector<16x1xf32>
    %25 = vector.extract_strided_slice %23 {offsets = [0, 1], sizes = [16, 1], strides = [1, 1]} : vector<16x128xf32> to vector<16x1xf32>
    %26 = tpu.transpose %24, [1, 0] : vector<16x1xf32> -> vector<1x16xf32>
    %27 = vector.broadcast %25 : vector<16x1xf32> to vector<16x16xf32>
    %28 = vector.broadcast %26 : vector<1x16xf32> to vector<16x16xf32>
    %29 = arith.addf %27, %28 : vector<16x16xf32>
    %cst_17 = arith.constant 0.000000e+00 : f32
    %30 = vector.broadcast %cst_17 : f32 to vector<16x16xf32>
    %31 = arith.cmpf ogt, %29, %30 : vector<16x16xf32>
    %cst_18 = arith.constant 2.000000e-01 : f32
    %32 = vector.broadcast %cst_18 : f32 to vector<16x16xf32>
    %33 = arith.mulf %32, %29 : vector<16x16xf32>
    %34 = arith.select %31, %29, %33 : vector<16x16xi1>, vector<16x16xf32>
    %35 = arith.addf %34, %5 : vector<16x16xf32>
    %cst_19 = arith.constant dense<0xFF800000> : vector<16xf32>
    %36 = vector.multi_reduction <maximumf>, %35, %cst_19 [1] : vector<16x16xf32> to vector<16xf32>
    %37 = vector.shape_cast %36 : vector<16xf32> to vector<16x1xf32>
    %38 = vector.broadcast %37 : vector<16x1xf32> to vector<16x16xf32>
    %39 = arith.subf %35, %38 : vector<16x16xf32>
    %40 = math.exp %39 : vector<16x16xf32>
    %cst_20 = arith.constant dense<0.000000e+00> : vector<16xf32>
    %41 = vector.multi_reduction <add>, %40, %cst_20 [1] : vector<16x16xf32> to vector<16xf32>
    %42 = vector.shape_cast %41 : vector<16xf32> to vector<16x1xf32>
    %cst_21 = arith.constant 9.99999968E-21 : f32
    %43 = vector.broadcast %cst_21 : f32 to vector<16x1xf32>
    %44 = arith.maximumf %42, %43 : vector<16x1xf32>
    %45 = tpu.reciprocal %44 {approx = true} : vector<16x1xf32> -> vector<16x1xf32>
    %46 = vector.broadcast %45 : vector<16x1xf32> to vector<16x16xf32>
    %47 = arith.mulf %40, %46 : vector<16x16xf32>
    %48 = arith.truncf %47 : vector<16x16xf32> to vector<16x16xbf16>
    %49 = vector.extract_strided_slice %20 {offsets = [0, 0], sizes = [16, 32], strides = [1, 1]} : vector<16x64xbf16> to vector<16x32xbf16>
    %cst_22 = arith.constant dense<0.000000e+00> : vector<16x32xf32>
    %50 = tpu.matmul %48, %49, %cst_22 {dimension_numbers = #tpu.dot_dimension_numbers<[1], [0], [0], [1], [0, 0, 1, 1], [], []>} : vector<16x16xbf16>, vector<16x32xbf16>, vector<16x32xf32> -> vector<16x32xf32>
    %c0_23 = arith.constant 0 : index
    %c0_24 = arith.constant 0 : index
    %51 = vector.load %arg7[%c0_23, %c0_24] : memref<1x64xf32, #tpu.memory_space<vmem>>, vector<1x32xf32>
    %52 = vector.broadcast %51 : vector<1x32xf32> to vector<16x32xf32>
    %53 = arith.addf %50, %52 : vector<16x32xf32>
    %c0_25 = arith.constant 0 : index
    %c0_26 = arith.constant 0 : index
    %54 = vector.load %arg24[%c0_25, %c0_26] : memref<16x64xf32, #tpu.memory_space<vmem>>, vector<16x32xf32>
    tpu.vector_store %arg24[%c0_25, %c0_26], %53 {strides = array<i32>} : memref<16x64xf32, #tpu.memory_space<vmem>>, vector<16x32xf32>,
    %55 = vector.extract_strided_slice %23 {offsets = [0, 2], sizes = [16, 1], strides = [1, 1]} : vector<16x128xf32> to vector<16x1xf32>
    %56 = vector.extract_strided_slice %23 {offsets = [0, 3], sizes = [16, 1], strides = [1, 1]} : vector<16x128xf32> to vector<16x1xf32>
    %57 = tpu.transpose %55, [1, 0] : vector<16x1xf32> -> vector<1x16xf32>
    %58 = vector.broadcast %56 : vector<16x1xf32> to vector<16x16xf32>
    %59 = vector.broadcast %57 : vector<1x16xf32> to vector<16x16xf32>
    %60 = arith.addf %58, %59 : vector<16x16xf32>
    %cst_27 = arith.constant 0.000000e+00 : f32
    %61 = vector.broadcast %cst_27 : f32 to vector<16x16xf32>
    %62 = arith.cmpf ogt, %60, %61 : vector<16x16xf32>
    %cst_28 = arith.constant 2.000000e-01 : f32
    %63 = vector.broadcast %cst_28 : f32 to vector<16x16xf32>
    %64 = arith.mulf %63, %60 : vector<16x16xf32>
    %65 = arith.select %62, %60, %64 : vector<16x16xi1>, vector<16x16xf32>
    %66 = arith.addf %65, %5 : vector<16x16xf32>
    %cst_29 = arith.constant dense<0xFF800000> : vector<16xf32>
    %67 = vector.multi_reduction <maximumf>, %66, %cst_29 [1] : vector<16x16xf32> to vector<16xf32>
    %68 = vector.shape_cast %67 : vector<16xf32> to vector<16x1xf32>
    %69 = vector.broadcast %68 : vector<16x1xf32> to vector<16x16xf32>
    %70 = arith.subf %66, %69 : vector<16x16xf32>
    %71 = math.exp %70 : vector<16x16xf32>
    %cst_30 = arith.constant dense<0.000000e+00> : vector<16xf32>
    %72 = vector.multi_reduction <add>, %71, %cst_30 [1] : vector<16x16xf32> to vector<16xf32>
    %73 = vector.shape_cast %72 : vector<16xf32> to vector<16x1xf32>
    %cst_31 = arith.constant 9.99999968E-21 : f32
    %74 = vector.broadcast %cst_31 : f32 to vector<16x1xf32>
    %75 = arith.maximumf %73, %74 : vector<16x1xf32>
    %76 = tpu.reciprocal %75 {approx = true} : vector<16x1xf32> -> vector<16x1xf32>
    %77 = vector.broadcast %76 : vector<16x1xf32> to vector<16x16xf32>
    %78 = arith.mulf %71, %77 : vector<16x16xf32>
    %79 = arith.truncf %78 : vector<16x16xf32> to vector<16x16xbf16>
    %80 = vector.extract_strided_slice %20 {offsets = [0, 32], sizes = [16, 32], strides = [1, 1]} : vector<16x64xbf16> to vector<16x32xbf16>
    %cst_32 = arith.constant dense<0.000000e+00> : vector<16x32xf32>
    %81 = tpu.matmul %79, %80, %cst_32 {dimension_numbers = #tpu.dot_dimension_numbers<[1], [0], [0], [1], [0, 0, 1, 1], [], []>} : vector<16x16xbf16>, vector<16x32xbf16>, vector<16x32xf32> -> vector<16x32xf32>
    %c0_33 = arith.constant 0 : index
    %c32 = arith.constant 32 : index
    %82 = vector.load %arg7[%c0_33, %c32] : memref<1x64xf32, #tpu.memory_space<vmem>>, vector<1x32xf32>
    %83 = vector.broadcast %82 : vector<1x32xf32> to vector<16x32xf32>
    %84 = arith.addf %81, %83 : vector<16x32xf32>
    %c0_34 = arith.constant 0 : index
    %c32_35 = arith.constant 32 : index
    %85 = vector.load %arg24[%c0_34, %c32_35] : memref<16x64xf32, #tpu.memory_space<vmem>>, vector<16x32xf32>
    tpu.vector_store %arg24[%c0_34, %c32_35], %84 {strides = array<i32>} : memref<16x64xf32, #tpu.memory_space<vmem>>, vector<16x32xf32>,
    %c0_36 = arith.constant 0 : index
    %c0_37 = arith.constant 0 : index
    %86 = vector.load %arg24[%c0_36, %c0_37] : memref<16x64xf32, #tpu.memory_space<vmem>>, vector<16x64xf32>
    %87 = arith.truncf %86 : vector<16x64xf32> to vector<16x64xbf16>
    %c0_38 = arith.constant 0 : index
    %c0_39 = arith.constant 0 : index
    %88 = vector.load %arg8[%c0_38, %c0_39] : memref<64x64xf32, #tpu.memory_space<vmem>>, vector<64x64xf32>
    %89 = arith.truncf %88 : vector<64x64xf32> to vector<64x64xbf16>
    %cst_40 = arith.constant dense<0.000000e+00> : vector<16x64xf32>
    %90 = tpu.matmul %87, %89, %cst_40 {dimension_numbers = #tpu.dot_dimension_numbers<[1], [0], [0], [1], [0, 0, 1, 1], [], []>} : vector<16x64xbf16>, vector<64x64xbf16>, vector<16x64xf32> -> vector<16x64xf32>
    %91 = arith.truncf %90 : vector<16x64xf32> to vector<16x64xbf16>
    %c0_41 = arith.constant 0 : index
    %c0_42 = arith.constant 0 : index
    %92 = vector.load %arg9[%c0_41, %c0_42] : memref<64x128xf32, #tpu.memory_space<vmem>>, vector<64x128xf32>
    %93 = arith.truncf %92 : vector<64x128xf32> to vector<64x128xbf16>
    %cst_43 = arith.constant dense<0.000000e+00> : vector<16x128xf32>
    %94 = tpu.matmul %91, %93, %cst_43 {dimension_numbers = #tpu.dot_dimension_numbers<[1], [0], [0], [1], [0, 0, 1, 1], [], []>} : vector<16x64xbf16>, vector<64x128xbf16>, vector<16x128xf32> -> vector<16x128xf32>
    %95 = vector.extract_strided_slice %94 {offsets = [0, 0], sizes = [16, 1], strides = [1, 1]} : vector<16x128xf32> to vector<16x1xf32>
    %96 = vector.extract_strided_slice %94 {offsets = [0, 1], sizes = [16, 1], strides = [1, 1]} : vector<16x128xf32> to vector<16x1xf32>
    %97 = tpu.transpose %95, [1, 0] : vector<16x1xf32> -> vector<1x16xf32>
    %98 = vector.broadcast %96 : vector<16x1xf32> to vector<16x16xf32>
    %99 = vector.broadcast %97 : vector<1x16xf32> to vector<16x16xf32>
    %100 = arith.addf %98, %99 : vector<16x16xf32>
    %cst_44 = arith.constant 0.000000e+00 : f32
    %101 = vector.broadcast %cst_44 : f32 to vector<16x16xf32>
    %102 = arith.cmpf ogt, %100, %101 : vector<16x16xf32>
    %cst_45 = arith.constant 2.000000e-01 : f32
    %103 = vector.broadcast %cst_45 : f32 to vector<16x16xf32>
    %104 = arith.mulf %103, %100 : vector<16x16xf32>
    %105 = arith.select %102, %100, %104 : vector<16x16xi1>, vector<16x16xf32>
    %106 = arith.addf %105, %5 : vector<16x16xf32>
    %cst_46 = arith.constant dense<0xFF800000> : vector<16xf32>
    %107 = vector.multi_reduction <maximumf>, %106, %cst_46 [1] : vector<16x16xf32> to vector<16xf32>
    %108 = vector.shape_cast %107 : vector<16xf32> to vector<16x1xf32>
    %109 = vector.broadcast %108 : vector<16x1xf32> to vector<16x16xf32>
    %110 = arith.subf %106, %109 : vector<16x16xf32>
    %111 = math.exp %110 : vector<16x16xf32>
    %cst_47 = arith.constant dense<0.000000e+00> : vector<16xf32>
    %112 = vector.multi_reduction <add>, %111, %cst_47 [1] : vector<16x16xf32> to vector<16xf32>
    %113 = vector.shape_cast %112 : vector<16xf32> to vector<16x1xf32>
    %cst_48 = arith.constant 9.99999968E-21 : f32
    %114 = vector.broadcast %cst_48 : f32 to vector<16x1xf32>
    %115 = arith.maximumf %113, %114 : vector<16x1xf32>
    %116 = tpu.reciprocal %115 {approx = true} : vector<16x1xf32> -> vector<16x1xf32>
    %117 = vector.broadcast %116 : vector<16x1xf32> to vector<16x16xf32>
    %118 = arith.mulf %111, %117 : vector<16x16xf32>
    %119 = arith.truncf %118 : vector<16x16xf32> to vector<16x16xbf16>
    %120 = vector.extract_strided_slice %91 {offsets = [0, 0], sizes = [16, 32], strides = [1, 1]} : vector<16x64xbf16> to vector<16x32xbf16>
    %cst_49 = arith.constant dense<0.000000e+00> : vector<16x32xf32>
    %121 = tpu.matmul %119, %120, %cst_49 {dimension_numbers = #tpu.dot_dimension_numbers<[1], [0], [0], [1], [0, 0, 1, 1], [], []>} : vector<16x16xbf16>, vector<16x32xbf16>, vector<16x32xf32> -> vector<16x32xf32>
    %c0_50 = arith.constant 0 : index
    %c0_51 = arith.constant 0 : index
    %122 = vector.load %arg10[%c0_50, %c0_51] : memref<1x64xf32, #tpu.memory_space<vmem>>, vector<1x32xf32>
    %123 = vector.broadcast %122 : vector<1x32xf32> to vector<16x32xf32>
    %124 = arith.addf %121, %123 : vector<16x32xf32>
    %c0_52 = arith.constant 0 : index
    %c0_53 = arith.constant 0 : index
    %125 = vector.load %arg24[%c0_52, %c0_53] : memref<16x64xf32, #tpu.memory_space<vmem>>, vector<16x32xf32>
    tpu.vector_store %arg24[%c0_52, %c0_53], %124 {strides = array<i32>} : memref<16x64xf32, #tpu.memory_space<vmem>>, vector<16x32xf32>,
    %126 = vector.extract_strided_slice %94 {offsets = [0, 2], sizes = [16, 1], strides = [1, 1]} : vector<16x128xf32> to vector<16x1xf32>
    %127 = vector.extract_strided_slice %94 {offsets = [0, 3], sizes = [16, 1], strides = [1, 1]} : vector<16x128xf32> to vector<16x1xf32>
    %128 = tpu.transpose %126, [1, 0] : vector<16x1xf32> -> vector<1x16xf32>
    %129 = vector.broadcast %127 : vector<16x1xf32> to vector<16x16xf32>
    %130 = vector.broadcast %128 : vector<1x16xf32> to vector<16x16xf32>
    %131 = arith.addf %129, %130 : vector<16x16xf32>
    %cst_54 = arith.constant 0.000000e+00 : f32
    %132 = vector.broadcast %cst_54 : f32 to vector<16x16xf32>
    %133 = arith.cmpf ogt, %131, %132 : vector<16x16xf32>
    %cst_55 = arith.constant 2.000000e-01 : f32
    %134 = vector.broadcast %cst_55 : f32 to vector<16x16xf32>
    %135 = arith.mulf %134, %131 : vector<16x16xf32>
    %136 = arith.select %133, %131, %135 : vector<16x16xi1>, vector<16x16xf32>
    %137 = arith.addf %136, %5 : vector<16x16xf32>
    %cst_56 = arith.constant dense<0xFF800000> : vector<16xf32>
    %138 = vector.multi_reduction <maximumf>, %137, %cst_56 [1] : vector<16x16xf32> to vector<16xf32>
    %139 = vector.shape_cast %138 : vector<16xf32> to vector<16x1xf32>
    %140 = vector.broadcast %139 : vector<16x1xf32> to vector<16x16xf32>
    %141 = arith.subf %137, %140 : vector<16x16xf32>
    %142 = math.exp %141 : vector<16x16xf32>
    %cst_57 = arith.constant dense<0.000000e+00> : vector<16xf32>
    %143 = vector.multi_reduction <add>, %142, %cst_57 [1] : vector<16x16xf32> to vector<16xf32>
    %144 = vector.shape_cast %143 : vector<16xf32> to vector<16x1xf32>
    %cst_58 = arith.constant 9.99999968E-21 : f32
    %145 = vector.broadcast %cst_58 : f32 to vector<16x1xf32>
    %146 = arith.maximumf %144, %145 : vector<16x1xf32>
    %147 = tpu.reciprocal %146 {approx = true} : vector<16x1xf32> -> vector<16x1xf32>
    %148 = vector.broadcast %147 : vector<16x1xf32> to vector<16x16xf32>
    %149 = arith.mulf %142, %148 : vector<16x16xf32>
    %150 = arith.truncf %149 : vector<16x16xf32> to vector<16x16xbf16>
    %151 = vector.extract_strided_slice %91 {offsets = [0, 32], sizes = [16, 32], strides = [1, 1]} : vector<16x64xbf16> to vector<16x32xbf16>
    %cst_59 = arith.constant dense<0.000000e+00> : vector<16x32xf32>
    %152 = tpu.matmul %150, %151, %cst_59 {dimension_numbers = #tpu.dot_dimension_numbers<[1], [0], [0], [1], [0, 0, 1, 1], [], []>} : vector<16x16xbf16>, vector<16x32xbf16>, vector<16x32xf32> -> vector<16x32xf32>
    %c0_60 = arith.constant 0 : index
    %c32_61 = arith.constant 32 : index
    %153 = vector.load %arg10[%c0_60, %c32_61] : memref<1x64xf32, #tpu.memory_space<vmem>>, vector<1x32xf32>
    %154 = vector.broadcast %153 : vector<1x32xf32> to vector<16x32xf32>
    %155 = arith.addf %152, %154 : vector<16x32xf32>
    %c0_62 = arith.constant 0 : index
    %c32_63 = arith.constant 32 : index
    %156 = vector.load %arg24[%c0_62, %c32_63] : memref<16x64xf32, #tpu.memory_space<vmem>>, vector<16x32xf32>
    tpu.vector_store %arg24[%c0_62, %c32_63], %155 {strides = array<i32>} : memref<16x64xf32, #tpu.memory_space<vmem>>, vector<16x32xf32>,
    %c0_64 = arith.constant 0 : index
    %c0_65 = arith.constant 0 : index
    %157 = vector.load %arg24[%c0_64, %c0_65] : memref<16x64xf32, #tpu.memory_space<vmem>>, vector<16x64xf32>
    %158 = arith.truncf %157 : vector<16x64xf32> to vector<16x64xbf16>
    %c0_66 = arith.constant 0 : index
    %c0_67 = arith.constant 0 : index
    %159 = vector.load %arg11[%c0_66, %c0_67] : memref<64x64xf32, #tpu.memory_space<vmem>>, vector<64x64xf32>
    %160 = arith.truncf %159 : vector<64x64xf32> to vector<64x64xbf16>
    %cst_68 = arith.constant dense<0.000000e+00> : vector<16x64xf32>
    %161 = tpu.matmul %158, %160, %cst_68 {dimension_numbers = #tpu.dot_dimension_numbers<[1], [0], [0], [1], [0, 0, 1, 1], [], []>} : vector<16x64xbf16>, vector<64x64xbf16>, vector<16x64xf32> -> vector<16x64xf32>
    %162 = arith.truncf %161 : vector<16x64xf32> to vector<16x64xbf16>
    %c0_69 = arith.constant 0 : index
    %c0_70 = arith.constant 0 : index
    %163 = vector.load %arg12[%c0_69, %c0_70] : memref<64x128xf32, #tpu.memory_space<vmem>>, vector<64x128xf32>
    %164 = arith.truncf %163 : vector<64x128xf32> to vector<64x128xbf16>
    %cst_71 = arith.constant dense<0.000000e+00> : vector<16x128xf32>
    %165 = tpu.matmul %162, %164, %cst_71 {dimension_numbers = #tpu.dot_dimension_numbers<[1], [0], [0], [1], [0, 0, 1, 1], [], []>} : vector<16x64xbf16>, vector<64x128xbf16>, vector<16x128xf32> -> vector<16x128xf32>
    %166 = vector.extract_strided_slice %165 {offsets = [0, 0], sizes = [16, 1], strides = [1, 1]} : vector<16x128xf32> to vector<16x1xf32>
    %167 = vector.extract_strided_slice %165 {offsets = [0, 1], sizes = [16, 1], strides = [1, 1]} : vector<16x128xf32> to vector<16x1xf32>
    %168 = tpu.transpose %166, [1, 0] : vector<16x1xf32> -> vector<1x16xf32>
    %169 = vector.broadcast %167 : vector<16x1xf32> to vector<16x16xf32>
    %170 = vector.broadcast %168 : vector<1x16xf32> to vector<16x16xf32>
    %171 = arith.addf %169, %170 : vector<16x16xf32>
    %cst_72 = arith.constant 0.000000e+00 : f32
    %172 = vector.broadcast %cst_72 : f32 to vector<16x16xf32>
    %173 = arith.cmpf ogt, %171, %172 : vector<16x16xf32>
    %cst_73 = arith.constant 2.000000e-01 : f32
    %174 = vector.broadcast %cst_73 : f32 to vector<16x16xf32>
    %175 = arith.mulf %174, %171 : vector<16x16xf32>
    %176 = arith.select %173, %171, %175 : vector<16x16xi1>, vector<16x16xf32>
    %177 = arith.addf %176, %5 : vector<16x16xf32>
    %cst_74 = arith.constant dense<0xFF800000> : vector<16xf32>
    %178 = vector.multi_reduction <maximumf>, %177, %cst_74 [1] : vector<16x16xf32> to vector<16xf32>
    %179 = vector.shape_cast %178 : vector<16xf32> to vector<16x1xf32>
    %180 = vector.broadcast %179 : vector<16x1xf32> to vector<16x16xf32>
    %181 = arith.subf %177, %180 : vector<16x16xf32>
    %182 = math.exp %181 : vector<16x16xf32>
    %cst_75 = arith.constant dense<0.000000e+00> : vector<16xf32>
    %183 = vector.multi_reduction <add>, %182, %cst_75 [1] : vector<16x16xf32> to vector<16xf32>
    %184 = vector.shape_cast %183 : vector<16xf32> to vector<16x1xf32>
    %cst_76 = arith.constant 9.99999968E-21 : f32
    %185 = vector.broadcast %cst_76 : f32 to vector<16x1xf32>
    %186 = arith.maximumf %184, %185 : vector<16x1xf32>
    %187 = tpu.reciprocal %186 {approx = true} : vector<16x1xf32> -> vector<16x1xf32>
    %188 = vector.broadcast %187 : vector<16x1xf32> to vector<16x16xf32>
    %189 = arith.mulf %182, %188 : vector<16x16xf32>
    %190 = arith.truncf %189 : vector<16x16xf32> to vector<16x16xbf16>
    %191 = vector.extract_strided_slice %162 {offsets = [0, 0], sizes = [16, 32], strides = [1, 1]} : vector<16x64xbf16> to vector<16x32xbf16>
    %cst_77 = arith.constant dense<0.000000e+00> : vector<16x32xf32>
    %192 = tpu.matmul %190, %191, %cst_77 {dimension_numbers = #tpu.dot_dimension_numbers<[1], [0], [0], [1], [0, 0, 1, 1], [], []>} : vector<16x16xbf16>, vector<16x32xbf16>, vector<16x32xf32> -> vector<16x32xf32>
    %c0_78 = arith.constant 0 : index
    %c0_79 = arith.constant 0 : index
    %193 = vector.load %arg13[%c0_78, %c0_79] : memref<1x64xf32, #tpu.memory_space<vmem>>, vector<1x32xf32>
    %194 = vector.broadcast %193 : vector<1x32xf32> to vector<16x32xf32>
    %195 = arith.addf %192, %194 : vector<16x32xf32>
    %c0_80 = arith.constant 0 : index
    %c0_81 = arith.constant 0 : index
    %196 = vector.load %arg24[%c0_80, %c0_81] : memref<16x64xf32, #tpu.memory_space<vmem>>, vector<16x32xf32>
    tpu.vector_store %arg24[%c0_80, %c0_81], %195 {strides = array<i32>} : memref<16x64xf32, #tpu.memory_space<vmem>>, vector<16x32xf32>,
    %197 = vector.extract_strided_slice %165 {offsets = [0, 2], sizes = [16, 1], strides = [1, 1]} : vector<16x128xf32> to vector<16x1xf32>
    %198 = vector.extract_strided_slice %165 {offsets = [0, 3], sizes = [16, 1], strides = [1, 1]} : vector<16x128xf32> to vector<16x1xf32>
    %199 = tpu.transpose %197, [1, 0] : vector<16x1xf32> -> vector<1x16xf32>
    %200 = vector.broadcast %198 : vector<16x1xf32> to vector<16x16xf32>
    %201 = vector.broadcast %199 : vector<1x16xf32> to vector<16x16xf32>
    %202 = arith.addf %200, %201 : vector<16x16xf32>
    %cst_82 = arith.constant 0.000000e+00 : f32
    %203 = vector.broadcast %cst_82 : f32 to vector<16x16xf32>
    %204 = arith.cmpf ogt, %202, %203 : vector<16x16xf32>
    %cst_83 = arith.constant 2.000000e-01 : f32
    %205 = vector.broadcast %cst_83 : f32 to vector<16x16xf32>
    %206 = arith.mulf %205, %202 : vector<16x16xf32>
    %207 = arith.select %204, %202, %206 : vector<16x16xi1>, vector<16x16xf32>
    %208 = arith.addf %207, %5 : vector<16x16xf32>
    %cst_84 = arith.constant dense<0xFF800000> : vector<16xf32>
    %209 = vector.multi_reduction <maximumf>, %208, %cst_84 [1] : vector<16x16xf32> to vector<16xf32>
    %210 = vector.shape_cast %209 : vector<16xf32> to vector<16x1xf32>
    %211 = vector.broadcast %210 : vector<16x1xf32> to vector<16x16xf32>
    %212 = arith.subf %208, %211 : vector<16x16xf32>
    %213 = math.exp %212 : vector<16x16xf32>
    %cst_85 = arith.constant dense<0.000000e+00> : vector<16xf32>
    %214 = vector.multi_reduction <add>, %213, %cst_85 [1] : vector<16x16xf32> to vector<16xf32>
    %215 = vector.shape_cast %214 : vector<16xf32> to vector<16x1xf32>
    %cst_86 = arith.constant 9.99999968E-21 : f32
    %216 = vector.broadcast %cst_86 : f32 to vector<16x1xf32>
    %217 = arith.maximumf %215, %216 : vector<16x1xf32>
    %218 = tpu.reciprocal %217 {approx = true} : vector<16x1xf32> -> vector<16x1xf32>
    %219 = vector.broadcast %218 : vector<16x1xf32> to vector<16x16xf32>
    %220 = arith.mulf %213, %219 : vector<16x16xf32>
    %221 = arith.truncf %220 : vector<16x16xf32> to vector<16x16xbf16>
    %222 = vector.extract_strided_slice %162 {offsets = [0, 32], sizes = [16, 32], strides = [1, 1]} : vector<16x64xbf16> to vector<16x32xbf16>
    %cst_87 = arith.constant dense<0.000000e+00> : vector<16x32xf32>
    %223 = tpu.matmul %221, %222, %cst_87 {dimension_numbers = #tpu.dot_dimension_numbers<[1], [0], [0], [1], [0, 0, 1, 1], [], []>} : vector<16x16xbf16>, vector<16x32xbf16>, vector<16x32xf32> -> vector<16x32xf32>
    %c0_88 = arith.constant 0 : index
    %c32_89 = arith.constant 32 : index
    %224 = vector.load %arg13[%c0_88, %c32_89] : memref<1x64xf32, #tpu.memory_space<vmem>>, vector<1x32xf32>
    %225 = vector.broadcast %224 : vector<1x32xf32> to vector<16x32xf32>
    %226 = arith.addf %223, %225 : vector<16x32xf32>
    %c0_90 = arith.constant 0 : index
    %c32_91 = arith.constant 32 : index
    %227 = vector.load %arg24[%c0_90, %c32_91] : memref<16x64xf32, #tpu.memory_space<vmem>>, vector<16x32xf32>
    tpu.vector_store %arg24[%c0_90, %c32_91], %226 {strides = array<i32>} : memref<16x64xf32, #tpu.memory_space<vmem>>, vector<16x32xf32>,
    %c0_92 = arith.constant 0 : index
    %c0_93 = arith.constant 0 : index
    %228 = vector.load %arg24[%c0_92, %c0_93] : memref<16x64xf32, #tpu.memory_space<vmem>>, vector<16x64xf32>
    %229 = arith.truncf %228 : vector<16x64xf32> to vector<16x64xbf16>
    %c0_94 = arith.constant 0 : index
    %c0_95 = arith.constant 0 : index
    %230 = vector.load %arg14[%c0_94, %c0_95] : memref<64x64xf32, #tpu.memory_space<vmem>>, vector<64x64xf32>
    %231 = arith.truncf %230 : vector<64x64xf32> to vector<64x64xbf16>
    %cst_96 = arith.constant dense<0.000000e+00> : vector<16x64xf32>
    %232 = tpu.matmul %229, %231, %cst_96 {dimension_numbers = #tpu.dot_dimension_numbers<[1], [0], [0], [1], [0, 0, 1, 1], [], []>} : vector<16x64xbf16>, vector<64x64xbf16>, vector<16x64xf32> -> vector<16x64xf32>
    %233 = arith.truncf %232 : vector<16x64xf32> to vector<16x64xbf16>
    %c0_97 = arith.constant 0 : index
    %c0_98 = arith.constant 0 : index
    %234 = vector.load %arg15[%c0_97, %c0_98] : memref<64x128xf32, #tpu.memory_space<vmem>>, vector<64x128xf32>
    %235 = arith.truncf %234 : vector<64x128xf32> to vector<64x128xbf16>
    %cst_99 = arith.constant dense<0.000000e+00> : vector<16x128xf32>
    %236 = tpu.matmul %233, %235, %cst_99 {dimension_numbers = #tpu.dot_dimension_numbers<[1], [0], [0], [1], [0, 0, 1, 1], [], []>} : vector<16x64xbf16>, vector<64x128xbf16>, vector<16x128xf32> -> vector<16x128xf32>
    %237 = vector.extract_strided_slice %236 {offsets = [0, 0], sizes = [16, 1], strides = [1, 1]} : vector<16x128xf32> to vector<16x1xf32>
    %238 = vector.extract_strided_slice %236 {offsets = [0, 1], sizes = [16, 1], strides = [1, 1]} : vector<16x128xf32> to vector<16x1xf32>
    %239 = tpu.transpose %237, [1, 0] : vector<16x1xf32> -> vector<1x16xf32>
    %240 = vector.broadcast %238 : vector<16x1xf32> to vector<16x16xf32>
    %241 = vector.broadcast %239 : vector<1x16xf32> to vector<16x16xf32>
    %242 = arith.addf %240, %241 : vector<16x16xf32>
    %cst_100 = arith.constant 0.000000e+00 : f32
    %243 = vector.broadcast %cst_100 : f32 to vector<16x16xf32>
    %244 = arith.cmpf ogt, %242, %243 : vector<16x16xf32>
    %cst_101 = arith.constant 2.000000e-01 : f32
    %245 = vector.broadcast %cst_101 : f32 to vector<16x16xf32>
    %246 = arith.mulf %245, %242 : vector<16x16xf32>
    %247 = arith.select %244, %242, %246 : vector<16x16xi1>, vector<16x16xf32>
    %248 = arith.addf %247, %5 : vector<16x16xf32>
    %cst_102 = arith.constant dense<0xFF800000> : vector<16xf32>
    %249 = vector.multi_reduction <maximumf>, %248, %cst_102 [1] : vector<16x16xf32> to vector<16xf32>
    %250 = vector.shape_cast %249 : vector<16xf32> to vector<16x1xf32>
    %251 = vector.broadcast %250 : vector<16x1xf32> to vector<16x16xf32>
    %252 = arith.subf %248, %251 : vector<16x16xf32>
    %253 = math.exp %252 : vector<16x16xf32>
    %cst_103 = arith.constant dense<0.000000e+00> : vector<16xf32>
    %254 = vector.multi_reduction <add>, %253, %cst_103 [1] : vector<16x16xf32> to vector<16xf32>
    %255 = vector.shape_cast %254 : vector<16xf32> to vector<16x1xf32>
    %cst_104 = arith.constant 9.99999968E-21 : f32
    %256 = vector.broadcast %cst_104 : f32 to vector<16x1xf32>
    %257 = arith.maximumf %255, %256 : vector<16x1xf32>
    %258 = tpu.reciprocal %257 {approx = true} : vector<16x1xf32> -> vector<16x1xf32>
    %259 = vector.broadcast %258 : vector<16x1xf32> to vector<16x16xf32>
    %260 = arith.mulf %253, %259 : vector<16x16xf32>
    %261 = arith.truncf %260 : vector<16x16xf32> to vector<16x16xbf16>
    %262 = vector.extract_strided_slice %233 {offsets = [0, 0], sizes = [16, 32], strides = [1, 1]} : vector<16x64xbf16> to vector<16x32xbf16>
    %cst_105 = arith.constant dense<0.000000e+00> : vector<16x32xf32>
    %263 = tpu.matmul %261, %262, %cst_105 {dimension_numbers = #tpu.dot_dimension_numbers<[1], [0], [0], [1], [0, 0, 1, 1], [], []>} : vector<16x16xbf16>, vector<16x32xbf16>, vector<16x32xf32> -> vector<16x32xf32>
    %c0_106 = arith.constant 0 : index
    %c0_107 = arith.constant 0 : index
    %264 = vector.load %arg16[%c0_106, %c0_107] : memref<1x64xf32, #tpu.memory_space<vmem>>, vector<1x32xf32>
    %265 = vector.broadcast %264 : vector<1x32xf32> to vector<16x32xf32>
    %266 = arith.addf %263, %265 : vector<16x32xf32>
    %c0_108 = arith.constant 0 : index
    %c0_109 = arith.constant 0 : index
    %267 = vector.load %arg24[%c0_108, %c0_109] : memref<16x64xf32, #tpu.memory_space<vmem>>, vector<16x32xf32>
    tpu.vector_store %arg24[%c0_108, %c0_109], %266 {strides = array<i32>} : memref<16x64xf32, #tpu.memory_space<vmem>>, vector<16x32xf32>,
    %268 = vector.extract_strided_slice %236 {offsets = [0, 2], sizes = [16, 1], strides = [1, 1]} : vector<16x128xf32> to vector<16x1xf32>
    %269 = vector.extract_strided_slice %236 {offsets = [0, 3], sizes = [16, 1], strides = [1, 1]} : vector<16x128xf32> to vector<16x1xf32>
    %270 = tpu.transpose %268, [1, 0] : vector<16x1xf32> -> vector<1x16xf32>
    %271 = vector.broadcast %269 : vector<16x1xf32> to vector<16x16xf32>
    %272 = vector.broadcast %270 : vector<1x16xf32> to vector<16x16xf32>
    %273 = arith.addf %271, %272 : vector<16x16xf32>
    %cst_110 = arith.constant 0.000000e+00 : f32
    %274 = vector.broadcast %cst_110 : f32 to vector<16x16xf32>
    %275 = arith.cmpf ogt, %273, %274 : vector<16x16xf32>
    %cst_111 = arith.constant 2.000000e-01 : f32
    %276 = vector.broadcast %cst_111 : f32 to vector<16x16xf32>
    %277 = arith.mulf %276, %273 : vector<16x16xf32>
    %278 = arith.select %275, %273, %277 : vector<16x16xi1>, vector<16x16xf32>
    %279 = arith.addf %278, %5 : vector<16x16xf32>
    %cst_112 = arith.constant dense<0xFF800000> : vector<16xf32>
    %280 = vector.multi_reduction <maximumf>, %279, %cst_112 [1] : vector<16x16xf32> to vector<16xf32>
    %281 = vector.shape_cast %280 : vector<16xf32> to vector<16x1xf32>
    %282 = vector.broadcast %281 : vector<16x1xf32> to vector<16x16xf32>
    %283 = arith.subf %279, %282 : vector<16x16xf32>
    %284 = math.exp %283 : vector<16x16xf32>
    %cst_113 = arith.constant dense<0.000000e+00> : vector<16xf32>
    %285 = vector.multi_reduction <add>, %284, %cst_113 [1] : vector<16x16xf32> to vector<16xf32>
    %286 = vector.shape_cast %285 : vector<16xf32> to vector<16x1xf32>
    %cst_114 = arith.constant 9.99999968E-21 : f32
    %287 = vector.broadcast %cst_114 : f32 to vector<16x1xf32>
    %288 = arith.maximumf %286, %287 : vector<16x1xf32>
    %289 = tpu.reciprocal %288 {approx = true} : vector<16x1xf32> -> vector<16x1xf32>
    %290 = vector.broadcast %289 : vector<16x1xf32> to vector<16x16xf32>
    %291 = arith.mulf %284, %290 : vector<16x16xf32>
    %292 = arith.truncf %291 : vector<16x16xf32> to vector<16x16xbf16>
    %293 = vector.extract_strided_slice %233 {offsets = [0, 32], sizes = [16, 32], strides = [1, 1]} : vector<16x64xbf16> to vector<16x32xbf16>
    %cst_115 = arith.constant dense<0.000000e+00> : vector<16x32xf32>
    %294 = tpu.matmul %292, %293, %cst_115 {dimension_numbers = #tpu.dot_dimension_numbers<[1], [0], [0], [1], [0, 0, 1, 1], [], []>} : vector<16x16xbf16>, vector<16x32xbf16>, vector<16x32xf32> -> vector<16x32xf32>
    %c0_116 = arith.constant 0 : index
    %c32_117 = arith.constant 32 : index
    %295 = vector.load %arg16[%c0_116, %c32_117] : memref<1x64xf32, #tpu.memory_space<vmem>>, vector<1x32xf32>
    %296 = vector.broadcast %295 : vector<1x32xf32> to vector<16x32xf32>
    %297 = arith.addf %294, %296 : vector<16x32xf32>
    %c0_118 = arith.constant 0 : index
    %c32_119 = arith.constant 32 : index
    %298 = vector.load %arg24[%c0_118, %c32_119] : memref<16x64xf32, #tpu.memory_space<vmem>>, vector<16x32xf32>
    tpu.vector_store %arg24[%c0_118, %c32_119], %297 {strides = array<i32>} : memref<16x64xf32, #tpu.memory_space<vmem>>, vector<16x32xf32>,
    %c0_120 = arith.constant 0 : index
    %c0_121 = arith.constant 0 : index
    %299 = vector.load %arg24[%c0_120, %c0_121] : memref<16x64xf32, #tpu.memory_space<vmem>>, vector<16x64xf32>
    %300 = arith.truncf %299 : vector<16x64xf32> to vector<16x64xbf16>
    %c0_122 = arith.constant 0 : index
    %c0_123 = arith.constant 0 : index
    %301 = vector.load %arg17[%c0_122, %c0_123] : memref<64x64xf32, #tpu.memory_space<vmem>>, vector<64x64xf32>
    %302 = arith.truncf %301 : vector<64x64xf32> to vector<64x64xbf16>
    %cst_124 = arith.constant dense<0.000000e+00> : vector<16x64xf32>
    %303 = tpu.matmul %300, %302, %cst_124 {dimension_numbers = #tpu.dot_dimension_numbers<[1], [0], [0], [1], [0, 0, 1, 1], [], []>} : vector<16x64xbf16>, vector<64x64xbf16>, vector<16x64xf32> -> vector<16x64xf32>
    %304 = arith.truncf %303 : vector<16x64xf32> to vector<16x64xbf16>
    %c0_125 = arith.constant 0 : index
    %c0_126 = arith.constant 0 : index
    %305 = vector.load %arg18[%c0_125, %c0_126] : memref<64x128xf32, #tpu.memory_space<vmem>>, vector<64x128xf32>
    %306 = arith.truncf %305 : vector<64x128xf32> to vector<64x128xbf16>
    %cst_127 = arith.constant dense<0.000000e+00> : vector<16x128xf32>
    %307 = tpu.matmul %304, %306, %cst_127 {dimension_numbers = #tpu.dot_dimension_numbers<[1], [0], [0], [1], [0, 0, 1, 1], [], []>} : vector<16x64xbf16>, vector<64x128xbf16>, vector<16x128xf32> -> vector<16x128xf32>
    %308 = vector.extract_strided_slice %307 {offsets = [0, 0], sizes = [16, 1], strides = [1, 1]} : vector<16x128xf32> to vector<16x1xf32>
    %309 = vector.extract_strided_slice %307 {offsets = [0, 1], sizes = [16, 1], strides = [1, 1]} : vector<16x128xf32> to vector<16x1xf32>
    %310 = tpu.transpose %308, [1, 0] : vector<16x1xf32> -> vector<1x16xf32>
    %311 = vector.broadcast %309 : vector<16x1xf32> to vector<16x16xf32>
    %312 = vector.broadcast %310 : vector<1x16xf32> to vector<16x16xf32>
    %313 = arith.addf %311, %312 : vector<16x16xf32>
    %cst_128 = arith.constant 0.000000e+00 : f32
    %314 = vector.broadcast %cst_128 : f32 to vector<16x16xf32>
    %315 = arith.cmpf ogt, %313, %314 : vector<16x16xf32>
    %cst_129 = arith.constant 2.000000e-01 : f32
    %316 = vector.broadcast %cst_129 : f32 to vector<16x16xf32>
    %317 = arith.mulf %316, %313 : vector<16x16xf32>
    %318 = arith.select %315, %313, %317 : vector<16x16xi1>, vector<16x16xf32>
    %319 = arith.addf %318, %5 : vector<16x16xf32>
    %cst_130 = arith.constant dense<0xFF800000> : vector<16xf32>
    %320 = vector.multi_reduction <maximumf>, %319, %cst_130 [1] : vector<16x16xf32> to vector<16xf32>
    %321 = vector.shape_cast %320 : vector<16xf32> to vector<16x1xf32>
    %322 = vector.broadcast %321 : vector<16x1xf32> to vector<16x16xf32>
    %323 = arith.subf %319, %322 : vector<16x16xf32>
    %324 = math.exp %323 : vector<16x16xf32>
    %cst_131 = arith.constant dense<0.000000e+00> : vector<16xf32>
    %325 = vector.multi_reduction <add>, %324, %cst_131 [1] : vector<16x16xf32> to vector<16xf32>
    %326 = vector.shape_cast %325 : vector<16xf32> to vector<16x1xf32>
    %cst_132 = arith.constant 9.99999968E-21 : f32
    %327 = vector.broadcast %cst_132 : f32 to vector<16x1xf32>
    %328 = arith.maximumf %326, %327 : vector<16x1xf32>
    %329 = tpu.reciprocal %328 {approx = true} : vector<16x1xf32> -> vector<16x1xf32>
    %330 = vector.broadcast %329 : vector<16x1xf32> to vector<16x16xf32>
    %331 = arith.mulf %324, %330 : vector<16x16xf32>
    %332 = arith.truncf %331 : vector<16x16xf32> to vector<16x16xbf16>
    %333 = vector.extract_strided_slice %304 {offsets = [0, 0], sizes = [16, 32], strides = [1, 1]} : vector<16x64xbf16> to vector<16x32xbf16>
    %cst_133 = arith.constant dense<0.000000e+00> : vector<16x32xf32>
    %334 = tpu.matmul %332, %333, %cst_133 {dimension_numbers = #tpu.dot_dimension_numbers<[1], [0], [0], [1], [0, 0, 1, 1], [], []>} : vector<16x16xbf16>, vector<16x32xbf16>, vector<16x32xf32> -> vector<16x32xf32>
    %c0_134 = arith.constant 0 : index
    %c0_135 = arith.constant 0 : index
    %335 = vector.load %arg19[%c0_134, %c0_135] : memref<1x64xf32, #tpu.memory_space<vmem>>, vector<1x32xf32>
    %336 = vector.broadcast %335 : vector<1x32xf32> to vector<16x32xf32>
    %337 = arith.addf %334, %336 : vector<16x32xf32>
    %c0_136 = arith.constant 0 : index
    %c0_137 = arith.constant 0 : index
    %338 = vector.load %arg24[%c0_136, %c0_137] : memref<16x64xf32, #tpu.memory_space<vmem>>, vector<16x32xf32>
    tpu.vector_store %arg24[%c0_136, %c0_137], %337 {strides = array<i32>} : memref<16x64xf32, #tpu.memory_space<vmem>>, vector<16x32xf32>,
    %339 = vector.extract_strided_slice %307 {offsets = [0, 2], sizes = [16, 1], strides = [1, 1]} : vector<16x128xf32> to vector<16x1xf32>
    %340 = vector.extract_strided_slice %307 {offsets = [0, 3], sizes = [16, 1], strides = [1, 1]} : vector<16x128xf32> to vector<16x1xf32>
    %341 = tpu.transpose %339, [1, 0] : vector<16x1xf32> -> vector<1x16xf32>
    %342 = vector.broadcast %340 : vector<16x1xf32> to vector<16x16xf32>
    %343 = vector.broadcast %341 : vector<1x16xf32> to vector<16x16xf32>
    %344 = arith.addf %342, %343 : vector<16x16xf32>
    %cst_138 = arith.constant 0.000000e+00 : f32
    %345 = vector.broadcast %cst_138 : f32 to vector<16x16xf32>
    %346 = arith.cmpf ogt, %344, %345 : vector<16x16xf32>
    %cst_139 = arith.constant 2.000000e-01 : f32
    %347 = vector.broadcast %cst_139 : f32 to vector<16x16xf32>
    %348 = arith.mulf %347, %344 : vector<16x16xf32>
    %349 = arith.select %346, %344, %348 : vector<16x16xi1>, vector<16x16xf32>
    %350 = arith.addf %349, %5 : vector<16x16xf32>
    %cst_140 = arith.constant dense<0xFF800000> : vector<16xf32>
    %351 = vector.multi_reduction <maximumf>, %350, %cst_140 [1] : vector<16x16xf32> to vector<16xf32>
    %352 = vector.shape_cast %351 : vector<16xf32> to vector<16x1xf32>
    %353 = vector.broadcast %352 : vector<16x1xf32> to vector<16x16xf32>
    %354 = arith.subf %350, %353 : vector<16x16xf32>
    %355 = math.exp %354 : vector<16x16xf32>
    %cst_141 = arith.constant dense<0.000000e+00> : vector<16xf32>
    %356 = vector.multi_reduction <add>, %355, %cst_141 [1] : vector<16x16xf32> to vector<16xf32>
    %357 = vector.shape_cast %356 : vector<16xf32> to vector<16x1xf32>
    %cst_142 = arith.constant 9.99999968E-21 : f32
    %358 = vector.broadcast %cst_142 : f32 to vector<16x1xf32>
    %359 = arith.maximumf %357, %358 : vector<16x1xf32>
    %360 = tpu.reciprocal %359 {approx = true} : vector<16x1xf32> -> vector<16x1xf32>
    %361 = vector.broadcast %360 : vector<16x1xf32> to vector<16x16xf32>
    %362 = arith.mulf %355, %361 : vector<16x16xf32>
    %363 = arith.truncf %362 : vector<16x16xf32> to vector<16x16xbf16>
    %364 = vector.extract_strided_slice %304 {offsets = [0, 32], sizes = [16, 32], strides = [1, 1]} : vector<16x64xbf16> to vector<16x32xbf16>
    %cst_143 = arith.constant dense<0.000000e+00> : vector<16x32xf32>
    %365 = tpu.matmul %363, %364, %cst_143 {dimension_numbers = #tpu.dot_dimension_numbers<[1], [0], [0], [1], [0, 0, 1, 1], [], []>} : vector<16x16xbf16>, vector<16x32xbf16>, vector<16x32xf32> -> vector<16x32xf32>
    %c0_144 = arith.constant 0 : index
    %c32_145 = arith.constant 32 : index
    %366 = vector.load %arg19[%c0_144, %c32_145] : memref<1x64xf32, #tpu.memory_space<vmem>>, vector<1x32xf32>
    %367 = vector.broadcast %366 : vector<1x32xf32> to vector<16x32xf32>
    %368 = arith.addf %365, %367 : vector<16x32xf32>
    %c0_146 = arith.constant 0 : index
    %c32_147 = arith.constant 32 : index
    %369 = vector.load %arg24[%c0_146, %c32_147] : memref<16x64xf32, #tpu.memory_space<vmem>>, vector<16x32xf32>
    tpu.vector_store %arg24[%c0_146, %c32_147], %368 {strides = array<i32>} : memref<16x64xf32, #tpu.memory_space<vmem>>, vector<16x32xf32>,
    %c0_148 = arith.constant 0 : index
    %c0_149 = arith.constant 0 : index
    %370 = vector.load %arg24[%c0_148, %c0_149] : memref<16x64xf32, #tpu.memory_space<vmem>>, vector<16x64xf32>
    %371 = arith.truncf %370 : vector<16x64xf32> to vector<16x64xbf16>
    %c0_150 = arith.constant 0 : index
    %c0_151 = arith.constant 0 : index
    %372 = vector.load %arg20[%c0_150, %c0_151] : memref<64x32xf32, #tpu.memory_space<vmem>>, vector<64x32xf32>
    %373 = arith.truncf %372 : vector<64x32xf32> to vector<64x32xbf16>
    %cst_152 = arith.constant dense<0.000000e+00> : vector<16x32xf32>
    %374 = tpu.matmul %371, %373, %cst_152 {dimension_numbers = #tpu.dot_dimension_numbers<[1], [0], [0], [1], [0, 0, 1, 1], [], []>} : vector<16x64xbf16>, vector<64x32xbf16>, vector<16x32xf32> -> vector<16x32xf32>
    %375 = arith.truncf %374 : vector<16x32xf32> to vector<16x32xbf16>
    %c0_153 = arith.constant 0 : index
    %c0_154 = arith.constant 0 : index
    %376 = vector.load %arg21[%c0_153, %c0_154] : memref<32x128xf32, #tpu.memory_space<vmem>>, vector<32x128xf32>
    %377 = arith.truncf %376 : vector<32x128xf32> to vector<32x128xbf16>
    %cst_155 = arith.constant dense<0.000000e+00> : vector<16x128xf32>
    %378 = tpu.matmul %375, %377, %cst_155 {dimension_numbers = #tpu.dot_dimension_numbers<[1], [0], [0], [1], [0, 0, 1, 1], [], []>} : vector<16x32xbf16>, vector<32x128xbf16>, vector<16x128xf32> -> vector<16x128xf32>
    %379 = vector.extract_strided_slice %378 {offsets = [0, 0], sizes = [16, 1], strides = [1, 1]} : vector<16x128xf32> to vector<16x1xf32>
    %380 = vector.extract_strided_slice %378 {offsets = [0, 1], sizes = [16, 1], strides = [1, 1]} : vector<16x128xf32> to vector<16x1xf32>
    %381 = tpu.transpose %379, [1, 0] : vector<16x1xf32> -> vector<1x16xf32>
    %382 = vector.broadcast %380 : vector<16x1xf32> to vector<16x16xf32>
    %383 = vector.broadcast %381 : vector<1x16xf32> to vector<16x16xf32>
    %384 = arith.addf %382, %383 : vector<16x16xf32>
    %cst_156 = arith.constant 0.000000e+00 : f32
    %385 = vector.broadcast %cst_156 : f32 to vector<16x16xf32>
    %386 = arith.cmpf ogt, %384, %385 : vector<16x16xf32>
    %cst_157 = arith.constant 2.000000e-01 : f32
    %387 = vector.broadcast %cst_157 : f32 to vector<16x16xf32>
    %388 = arith.mulf %387, %384 : vector<16x16xf32>
    %389 = arith.select %386, %384, %388 : vector<16x16xi1>, vector<16x16xf32>
    %390 = arith.addf %389, %5 : vector<16x16xf32>
    %cst_158 = arith.constant dense<0xFF800000> : vector<16xf32>
    %391 = vector.multi_reduction <maximumf>, %390, %cst_158 [1] : vector<16x16xf32> to vector<16xf32>
    %392 = vector.shape_cast %391 : vector<16xf32> to vector<16x1xf32>
    %393 = vector.broadcast %392 : vector<16x1xf32> to vector<16x16xf32>
    %394 = arith.subf %390, %393 : vector<16x16xf32>
    %395 = math.exp %394 : vector<16x16xf32>
    %cst_159 = arith.constant dense<0.000000e+00> : vector<16xf32>
    %396 = vector.multi_reduction <add>, %395, %cst_159 [1] : vector<16x16xf32> to vector<16xf32>
    %397 = vector.shape_cast %396 : vector<16xf32> to vector<16x1xf32>
    %cst_160 = arith.constant 9.99999968E-21 : f32
    %398 = vector.broadcast %cst_160 : f32 to vector<16x1xf32>
    %399 = arith.maximumf %397, %398 : vector<16x1xf32>
    %400 = tpu.reciprocal %399 {approx = true} : vector<16x1xf32> -> vector<16x1xf32>
    %401 = vector.broadcast %400 : vector<16x1xf32> to vector<16x16xf32>
    %402 = arith.mulf %395, %401 : vector<16x16xf32>
    %403 = arith.truncf %402 : vector<16x16xf32> to vector<16x16xbf16>
    %cst_161 = arith.constant dense<0.000000e+00> : vector<16x32xf32>
    %404 = tpu.matmul %403, %375, %cst_161 {dimension_numbers = #tpu.dot_dimension_numbers<[1], [0], [0], [1], [0, 0, 1, 1], [], []>} : vector<16x16xbf16>, vector<16x32xbf16>, vector<16x32xf32> -> vector<16x32xf32>
    %c0_162 = arith.constant 0 : index
    %c0_163 = arith.constant 0 : index
    %405 = vector.load %arg22[%c0_162, %c0_163] : memref<1x32xf32, #tpu.memory_space<vmem>>, vector<1x32xf32>
    %406 = vector.broadcast %405 : vector<1x32xf32> to vector<16x32xf32>
    %407 = arith.addf %404, %406 : vector<16x32xf32>
    %c0_164 = arith.constant 0 : index
    %c0_165 = arith.constant 0 : index
    %408 = vector.load %arg23[%c0_164, %c0_165] : memref<16x32xf32, #tpu.memory_space<vmem>>, vector<16x32xf32>
    tpu.vector_store %arg23[%c0_164, %c0_165], %407 {strides = array<i32>} : memref<16x32xf32, #tpu.memory_space<vmem>>, vector<16x32xf32>,
    return
  }
  func.func @transform_0(%arg0: i32) -> (i32, i32) {
    %c0_i32 = arith.constant 0 : i32
    %c0_i32_0 = arith.constant 0 : i32
    %c0_i32_1 = arith.constant 0 : i32
    return %c0_i32, %c0_i32_0 : i32, i32
  }
  func.func @transform_1(%arg0: i32) -> (i32, i32) {
    %c0_i32 = arith.constant 0 : i32
    %c0_i32_0 = arith.constant 0 : i32
    %c0_i32_1 = arith.constant 0 : i32
    return %c0_i32, %c0_i32_0 : i32, i32
  }
  func.func @transform_2(%arg0: i32) -> (i32, i32) {
    %c0_i32 = arith.constant 0 : i32
    %c0_i32_0 = arith.constant 0 : i32
    %c0_i32_1 = arith.constant 0 : i32
    return %c0_i32, %c0_i32_0 : i32, i32
  }
  func.func @transform_3(%arg0: i32) -> (i32, i32) {
    %c0_i32 = arith.constant 0 : i32
    %c0_i32_0 = arith.constant 0 : i32
    %c0_i32_1 = arith.constant 0 : i32
    return %c0_i32, %c0_i32_0 : i32, i32
  }
  func.func @transform_4(%arg0: i32) -> (i32, i32) {
    %c0_i32 = arith.constant 0 : i32
    %c0_i32_0 = arith.constant 0 : i32
    %c0_i32_1 = arith.constant 0 : i32
    return %c0_i32, %c0_i32_0 : i32, i32
  }
  func.func @transform_5(%arg0: i32) -> (i32, i32) {
    %c0_i32 = arith.constant 0 : i32
    %c0_i32_0 = arith.constant 0 : i32
    %c0_i32_1 = arith.constant 0 : i32
    return %c0_i32, %c0_i32_0 : i32, i32
  }
  func.func @transform_6(%arg0: i32) -> (i32, i32) {
    %c0_i32 = arith.constant 0 : i32
    %c0_i32_0 = arith.constant 0 : i32
    %c0_i32_1 = arith.constant 0 : i32
    return %c0_i32, %c0_i32_0 : i32, i32
  }
  func.func @transform_7(%arg0: i32) -> (i32, i32) {
    %c0_i32 = arith.constant 0 : i32
    %c0_i32_0 = arith.constant 0 : i32
    %c0_i32_1 = arith.constant 0 : i32
    return %c0_i32, %c0_i32_0 : i32, i32
  }
  func.func @transform_8(%arg0: i32) -> (i32, i32) {
    %c0_i32 = arith.constant 0 : i32
    %c0_i32_0 = arith.constant 0 : i32
    %c0_i32_1 = arith.constant 0 : i32
    return %c0_i32, %c0_i32_0 : i32, i32
  }
  func.func @transform_9(%arg0: i32) -> (i32, i32) {
    %c0_i32 = arith.constant 0 : i32
    %c0_i32_0 = arith.constant 0 : i32
    %c0_i32_1 = arith.constant 0 : i32
    return %c0_i32, %c0_i32_0 : i32, i32
  }
  func.func @transform_10(%arg0: i32) -> (i32, i32) {
    %c0_i32 = arith.constant 0 : i32
    %c0_i32_0 = arith.constant 0 : i32
    %c0_i32_1 = arith.constant 0 : i32
    return %c0_i32, %c0_i32_0 : i32, i32
  }
  func.func @transform_11(%arg0: i32) -> (i32, i32) {
    %c0_i32 = arith.constant 0 : i32
    %c0_i32_0 = arith.constant 0 : i32
    %c0_i32_1 = arith.constant 0 : i32
    return %c0_i32, %c0_i32_0 : i32, i32
  }
  func.func @transform_12(%arg0: i32) -> (i32, i32) {
    %c0_i32 = arith.constant 0 : i32
    %c0_i32_0 = arith.constant 0 : i32
    %c0_i32_1 = arith.constant 0 : i32
    return %c0_i32, %c0_i32_0 : i32, i32
  }
  func.func @transform_13(%arg0: i32) -> (i32, i32) {
    %c0_i32 = arith.constant 0 : i32
    %c0_i32_0 = arith.constant 0 : i32
    %c0_i32_1 = arith.constant 0 : i32
    return %c0_i32, %c0_i32_0 : i32, i32
  }
  func.func @transform_14(%arg0: i32) -> (i32, i32) {
    %c0_i32 = arith.constant 0 : i32
    %c0_i32_0 = arith.constant 0 : i32
    %c0_i32_1 = arith.constant 0 : i32
    return %c0_i32, %c0_i32_0 : i32, i32
  }
  func.func @transform_15(%arg0: i32) -> (i32, i32) {
    %c0_i32 = arith.constant 0 : i32
    %c0_i32_0 = arith.constant 0 : i32
    %c0_i32_1 = arith.constant 0 : i32
    return %c0_i32, %c0_i32_0 : i32, i32
  }
  func.func @transform_16(%arg0: i32) -> (i32, i32) {
    %c0_i32 = arith.constant 0 : i32
    %c0_i32_0 = arith.constant 0 : i32
    %c0_i32_1 = arith.constant 0 : i32
    return %c0_i32, %c0_i32_0 : i32, i32
  }
  func.func @transform_17(%arg0: i32) -> (i32, i32) {
    %c0_i32 = arith.constant 0 : i32
    %c0_i32_0 = arith.constant 0 : i32
    %c0_i32_1 = arith.constant 0 : i32
    return %c0_i32, %c0_i32_0 : i32, i32
  }
  func.func @transform_18(%arg0: i32) -> (i32, i32) {
    %c0_i32 = arith.constant 0 : i32
    %c0_i32_0 = arith.constant 0 : i32
    %c0_i32_1 = arith.constant 0 : i32
    return %c0_i32, %c0_i32_0 : i32, i32
  }
  func.func @transform_19(%arg0: i32) -> (i32, i32) {
    %c0_i32 = arith.constant 0 : i32
    %c0_i32_0 = arith.constant 0 : i32
    %c0_i32_1 = arith.constant 0 : i32
    return %c0_i32, %c0_i32_0 : i32, i32
  }
  func.func @transform_20(%arg0: i32) -> (i32, i32) {
    %c0_i32 = arith.constant 0 : i32
    %c0_i32_0 = arith.constant 0 : i32
    %c0_i32_1 = arith.constant 0 : i32
    return %c0_i32, %c0_i32_0 : i32, i32
  }
  func.func @transform_21(%arg0: i32) -> (i32, i32) {
    %c0_i32 = arith.constant 0 : i32
    %c0_i32_0 = arith.constant 0 : i32
    %c0_i32_1 = arith.constant 0 : i32
    return %c0_i32, %c0_i32_0 : i32, i32
  }
  func.func @transform_22(%arg0: i32) -> (i32, i32) {
    %c0_i32 = arith.constant 0 : i32
    %c0_i32_0 = arith.constant 0 : i32
    %c0_i32_1 = arith.constant 0 : i32
    return %c0_i32, %c0_i32_0 : i32, i32
  }
}

</mosaic_0001>

<bundles_post_ra>
// kernel: tpu_custom_call.1
= control target key start
LH: loop header
LB: loop body
LE: loop exit
PB: predicated region body
PF: predicated region fallthrough
CT: control target
= control target key end

     0   :  { %s2890_s0 = inlined_call_operand.hbm [shape: f32[16,16], index: 0, kind: input, shape index: {}]   ;;  %s2891_s1 = inlined_call_operand.hbm [shape: f32[16,16], index: 1, kind: input, shape index: {}]   ;;  %s2892_s2 = inlined_call_operand.hbm [shape: f32[16,32], index: 2, kind: input, shape index: {}]   ;;  %s2893_s3 = inlined_call_operand.vmem [shape: f32[1,32], index: 3, kind: input, shape index: {}]   ;;  %s2894_s4 = inlined_call_operand.vmem [shape: f32[32,64], index: 4, kind: input, shape index: {}]   ;;  %s2895_s5 = inlined_call_operand.vmem [shape: f32[64,128], index: 5, kind: input, shape index: {}]   ;;  %s2896_s6 = inlined_call_operand.vmem [shape: f32[1,64], index: 6, kind: input, shape index: {}]   ;;  %s2897_s7 = inlined_call_operand.hbm [shape: f32[64,64], index: 7, kind: input, shape index: {}]   ;;  %s2898_s8 = inlined_call_operand.hbm [shape: f32[64,128], index: 8, kind: input, shape index: {}]   ;;  %s2899_s9 = inlined_call_operand.vmem [shape: f32[1,64], index: 9, kind: input, shape index: {}]   ;;  %s2900_s10 = inlined_call_operand.hbm [shape: f32[64,64], index: 10, kind: input, shape index: {}]   ;;  %s2901_s11 = inlined_call_operand.hbm [shape: f32[64,128], index: 11, kind: input, shape index: {}]   ;;  %s2902_s12 = inlined_call_operand.vmem [shape: f32[1,64], index: 12, kind: input, shape index: {}]   ;;  %s2903_s13 = inlined_call_operand.hbm [shape: f32[64,64], index: 13, kind: input, shape index: {}]   ;;  %s2904_s14 = inlined_call_operand.hbm [shape: f32[64,128], index: 14, kind: input, shape index: {}]   ;;  %s2905_s15 = inlined_call_operand.vmem [shape: f32[1,64], index: 15, kind: input, shape index: {}]   ;;  %s2906_s16 = inlined_call_operand.hbm [shape: f32[64,64], index: 16, kind: input, shape index: {}]   ;;  %s2907_s17 = inlined_call_operand.hbm [shape: f32[64,128], index: 17, kind: input, shape index: {}]   ;;  %s2908_s18 = inlined_call_operand.vmem [shape: f32[1,64], index: 18, kind: input, shape index: {}]   ;;  %s2909_s19 = inlined_call_operand.vmem [shape: f32[64,32], index: 19, kind: input, shape index: {}]   ;;  %s2910_s20 = inlined_call_operand.hbm [shape: f32[32,128], index: 20, kind: input, shape index: {}]   ;;  %s2911_s21 = inlined_call_operand.vmem [shape: f32[1,32], index: 21, kind: input, shape index: {}]   ;;  %s2912_s22 = inlined_call_operand.hbm [shape: f32[16,32], index: 22, kind: output, shape index: {}]  }
   0x1   :  { %2916 = sst [smem:[#allocation32_spill]] %s2890_s0 }
   0x2   :  { %2917 = sst [smem:[#allocation33_spill]] %s2891_s1 }
   0x3   :  { %2918 = sst [smem:[#allocation34_spill]] %s2892_s2 }
   0x4   :  { %2919 = sst [smem:[#allocation35_spill]] %s2893_s3 }
   0x5   :  { %2920 = sst [smem:[#allocation36_spill]] %s2894_s4 }
   0x6   :  { %2921 = sst [smem:[#allocation37_spill]] %s2895_s5 }
   0x7   :  { %2922 = sst [smem:[#allocation38_spill]] %s2896_s6 }
   0x8   :  { %27 = vsyncpa [#allocation4], 0 }
   0x9   :  { %28 = vsyncpa [#allocation7], 0 }
   0xa   :  { %29 = vsyncpa [#allocation10], 0 }
   0xb   :  { %30 = vsyncpa [#allocation13], 0 }
   0xc   :  { %31 = vsyncpa [#allocation16], 0 }
   0xd   :  { %32 = vsyncpa [#allocation19], 0 }
   0xe   :  { %33 = vsyncpa [#allocation22], 0 }
   0xf   :  { %34 = vsyncpa [#allocation5], 0  ;;  %s2923_s29 = sld [smem:[#allocation33_spill]]  ;;  %s2403_s4 = smov [#allocation6]  }
  0x10   :  { %s54_s0 = sshll.u32 %s2403_s4, 4  ;;  %s86_s5 = sshll.u32 %s2897_s7, 4  ;;  %s55_s0 = int_to_ptr.vmem [resolvable:$true] %s54_s0  ;;  %s87_s5 = int_to_ptr.hbm [resolvable:$true] %s86_s5 }
  0x11   :  { %s2404_s24 = smov 128   ;;  %s2405_s6 = smov 8  }
  0x12   :  { %s2406_s25 = smov [#allocation9]   ;;  %s114_s3 = sshll.u32 %s2900_s10, 4  ;;  %s115_s3 = int_to_ptr.hbm [resolvable:$true] %s114_s3 }
  0x13   :  { %s88_s26 = sshll.u32 %s2406_s25, 4  ;;  %s2407_s4 = smov [#allocation12]   ;;  %s89_s26 = int_to_ptr.vmem [resolvable:$true] %s88_s26 }
  0x14   :  { %94 = dma.hbm_to_vmem [thread:$0]  %s87_s5, 1024, %s89_s26, [#allocation10], %s2404_s24, %s2404_s24, %s2405_s6  }
  0x15   :  { %s52_s30 = sshll.u32 %s2923_s29, 4  ;;  %s142_s29 = sshll.u32 %s2903_s13, 4  ;;  %s53_s30 = int_to_ptr.hbm [resolvable:$true] %s52_s30  ;;  %s143_s29 = int_to_ptr.hbm [resolvable:$true] %s142_s29 }
  0x16   :  { %60 = dma.hbm_to_vmem [thread:$0]  %s53_s30, 256, %s55_s0, [#allocation7], %s2404_s24, %s2404_s24, %s2405_s6  }
  0x17   :  { %s116_s23 = sshll.u32 %s2407_s4, 4  ;;  %s2408_s30 = smov [#allocation15]   ;;  %s117_s23 = int_to_ptr.vmem [resolvable:$true] %s116_s23 }
  0x18   :  { %122 = dma.hbm_to_vmem [thread:$0]  %s115_s3, 1024, %s117_s23, [#allocation13], %s2404_s24, %s2404_s24, %s2405_s6  }
  0x19   :  { %s144_s10 = sshll.u32 %s2408_s30, 4  ;;  %s170_s25 = sshll.u32 %s2906_s16, 4  ;;  %s145_s10 = int_to_ptr.vmem [resolvable:$true] %s144_s10  ;;  %s171_s25 = int_to_ptr.hbm [resolvable:$true] %s170_s25 }
  0x1a   :  { %150 = dma.hbm_to_vmem [thread:$0]  %s143_s29, 1024, %s145_s10, [#allocation16], %s2404_s24, %s2404_s24, %s2405_s6  }
  0x1b   :  { %s2924_s26 = sld [smem:[#allocation32_spill]]  ;;  %s2409_s27 = smov [#allocation18]  }
  0x1c   :  { %s172_s7 = sshll.u32 %s2409_s27, 4  ;;  %s2410_s3 = smov [#allocation3]   ;;  %s173_s7 = int_to_ptr.vmem [resolvable:$true] %s172_s7 }
  0x1d   :  { %178 = dma.hbm_to_vmem [thread:$0]  %s171_s25, 1024, %s173_s7, [#allocation19], %s2404_s24, %s2404_s24, %s2405_s6  }
  0x1e   :  { %s41_s16 = sshll.u32 %s2410_s3, 4  ;;  %s2925_s23 = sld [smem:[#allocation34_spill]]  ;;  %s42_s16 = int_to_ptr.vmem [resolvable:$true] %s41_s16 }
  0x1f   :  { %s99_s0 = sshll.u32 %s2898_s8, 4  ;;  %s2411_s1 = smov [#allocation8]   ;;  %s100_s0 = int_to_ptr.hbm [resolvable:$true] %s99_s0 }
  0x20   :  { %s67_s13 = sshll.u32 %s2411_s1, 4  ;;  %s2412_s25 = smov [#allocation11]   ;;  %s68_s13 = int_to_ptr.vmem [resolvable:$true] %s67_s13 }
  0x21   :  { %s39_s2 = sshll.u32 %s2924_s26, 4  ;;  %s101_s5 = sshll.u32 %s2412_s25, 4  ;;  %s40_s2 = int_to_ptr.hbm [resolvable:$true] %s39_s2  ;;  %s102_s5 = int_to_ptr.vmem [resolvable:$true] %s101_s5 }
  0x22   :  { %47 = dma.hbm_to_vmem [thread:$0]  %s40_s2, 256, %s42_s16, [#allocation4], %s2404_s24, %s2404_s24, %s2405_s6  }
  0x23   :  { %s127_s7 = sshll.u32 %s2901_s11, 4  ;;  %s155_s3 = sshll.u32 %s2904_s14, 4  ;;  %s128_s7 = int_to_ptr.hbm [resolvable:$true] %s127_s7  ;;  %s156_s3 = int_to_ptr.hbm [resolvable:$true] %s155_s3 }
  0x24   :  { %s65_s30 = sshll.u32 %s2925_s23, 4  ;;  %s2413_s16 = smov [#allocation14]   ;;  %s66_s30 = int_to_ptr.hbm [resolvable:$true] %s65_s30 }
  0x25   :  { %73 = dma.hbm_to_vmem [thread:$0]  %s66_s30, 256, %s68_s13, [#allocation7], %s2404_s24, %s2404_s24, %s2405_s6  }
  0x26   :  { %107 = dma.hbm_to_vmem [thread:$0]  %s100_s0, 1024, %s102_s5, [#allocation10], %s2404_s24, %s2404_s24, %s2405_s6  }
  0x27   :  { %s129_s28 = sshll.u32 %s2413_s16, 4  ;;  %s2414_s4 = smov [#allocation17]   ;;  %s130_s28 = int_to_ptr.vmem [resolvable:$true] %s129_s28 }
  0x28   :  { %135 = dma.hbm_to_vmem [thread:$0]  %s128_s7, 1024, %s130_s28, [#allocation13], %s2404_s24, %s2404_s24, %s2405_s6  }
  0x29   :  { %s157_s11 = sshll.u32 %s2414_s4, 4  ;;  %s183_s29 = sshll.u32 %s2907_s17, 4  ;;  %s158_s11 = int_to_ptr.vmem [resolvable:$true] %s157_s11  ;;  %s184_s29 = int_to_ptr.hbm [resolvable:$true] %s183_s29 }
  0x2a   :  { %163 = dma.hbm_to_vmem [thread:$0]  %s156_s3, 1024, %s158_s11, [#allocation16], %s2404_s24, %s2404_s24, %s2405_s6  }
  0x2b   :  { %s200_s0 = sshll.u32 %s2910_s20, 4  ;;  %s2415_s1 = smov [#allocation20]   ;;  %s201_s0 = int_to_ptr.hbm [resolvable:$true] %s200_s0 }
  0x2c   :  { %s185_s13 = sshll.u32 %s2415_s1, 4  ;;  %s2416_s25 = smov [#allocation21]   ;;  %s186_s13 = int_to_ptr.vmem [resolvable:$true] %s185_s13 }
  0x2d   :  { %191 = dma.hbm_to_vmem [thread:$0]  %s184_s29, 1024, %s186_s13, [#allocation19], %s2404_s24, %s2404_s24, %s2405_s6  }
  0x2e   :  { %s202_s17 = sshll.u32 %s2416_s25, 4  ;;  %s203_s17 = int_to_ptr.vmem [resolvable:$true] %s202_s17 }
  0x2f   :  { %208 = dma.hbm_to_vmem [thread:$0]  %s201_s0, 512, %s203_s17, [#allocation22], %s2404_s24, %s2404_s24, %s2405_s6  }
  0x30   :  { %2387 = dma.done.wait [#allocation4], 256  }
  0x31   :  { %2388 = vsyncadd [#allocation4], 4294967040 }
  0x32   :  { %2389 = dma.done.wait [#allocation7], 512  }
  0x33   :  { %2390 = vsyncadd [#allocation7], 4294966784 }
  0x34   :  { %2391 = dma.done.wait [#allocation10], 2048  }
  0x35   :  { %2392 = vsyncadd [#allocation10], 4294965248 }
  0x36   :  { %2393 = dma.done.wait [#allocation13], 2048  }
  0x37   :  { %2394 = vsyncadd [#allocation13], 4294965248 }
  0x38   :  { %2395 = dma.done.wait [#allocation16], 2048  }
  0x39   :  { %2396 = vsyncadd [#allocation16], 4294965248 }
  0x3a   :  { %2397 = dma.done.wait [#allocation19], 2048  }
  0x3b   :  { %2398 = vsyncadd [#allocation19], 4294965248 }
  0x3c   :  { %2399 = dma.done.wait [#allocation22], 512  }
  0x3d   :  { %2400 = vsyncadd [#allocation22], 4294966784  ;;  %v269_v0 = vld [vmem:[#allocation8] sm:$0xff]  ;;  %v270_v1 = vld [vmem:[#allocation8 + $0x8] sm:$0xff]  ;;  %vm276_vm0 = vcmask 130048   ;;  %s2926_s26 = sld [smem:[#allocation36_spill]] }
  0x3e   :  { %v266_v2 = vld [vmem:[#allocation3] sm:$0xff]  ;;  %v271_v3 = vpack.c.bf16 %v270_v1, %v269_v0  ;;  %v267_v4 = vld [vmem:[#allocation3 + $0x8] sm:$0xff]  ;;  %s2927_s11 = sld [smem:[#allocation35_spill]]  ;;  %vm303_vm1 = vcmask 261120   ;;  %v2417_v32 = vmov 3   ;;  %vm340_vm2 = vcmask 523264  }
  0x3f   :  { %v268_v5 = vpack.c.bf16 %v267_v4, %v266_v2  ;;  %s2928_s29 = sld [smem:[#allocation37_spill]]  ;;  %1959 = vset.pattern.permute.xlu1 %v2417_v32  ;;  %v2418_v40 = vmov 1   ;;  %s2419_s3 = smov 126   ;;  %v261_v48 = vld [vmem:[#allocation6 + $0x8] sm:$0xff]  ;;  %v2420_v54 = vmov -1e+30  }
  0x40   :  { %287 = vmatpush.bf16.msra.mxu0 %v271_v3  ;;  %1960 = vset.pattern.permute.xlu0 %v2418_v40  ;;  %vm263_vm3 = vcmp.gt.f32.partialorder %v261_v48, 0.0  ;;  %v260_v61 = vld [vmem:[#allocation6] sm:$0xff]  ;;  %s2421_s16 = smov 96   ;;  %s2422_s23 = smov 32   ;;  %vm576_vm9 = vcmask 523520  }
  0x41   :  { %v2663_v55 = vsel %vm263_vm3, 0.0, %v2420_v54  ;;  %vm262_vm5 = vcmp.gt.f32.partialorder %v260_v61, 0.0  ;;  %s2423_s17 = smov [#allocation23]  }
  0x43   :  { %1913 = vmatmul.msk.bf16.vlgmr.msra.gmra.mxu0 %vm276_vm0, %v268_v5  ;;  %v299_v6 = vld [vmem:[%s2926_s26 + $0x10] sm:$0xff]  ;;  %v300_v7 = vld [vmem:[%s2926_s26 + $0x18] sm:$0xff]  ;;  %v297_v9 = vld [vmem:[%s2926_s26] sm:$0xff]  ;;  %v2668_v5 = vsel %vm262_vm5, 0.0, %v2420_v54 }
  0x44   :  { %v302_v8 = vpack.c.bf16 %v300_v7, %v299_v6  ;;  %v298_v10 = vld [vmem:[%s2926_s26 + $0x8] sm:$0xff]  ;;  %v1975_v13 = vld [vmem:[%s2927_s11] ss:$0 sm:$0xff]  ;;  %s2929_s11 = sld [smem:[#allocation38_spill]]  ;;  %s1894_s26 = sshll.u32 %s2912_s22, 4  ;;  %s1895_s26 = int_to_ptr.hbm [resolvable:$true] %s1894_s26 }
  0x45   :  { %v301_v11 = vpack.c.bf16 %v298_v10, %v297_v9  ;;  %v329_v20 = vld [vmem:[%s2928_s29 + $0x30] sm:$0xff]  ;;  %v330_v21 = vld [vmem:[%s2928_s29 + $0x38] sm:$0xff]  ;;  %v327_v23 = vld [vmem:[%s2928_s29 + $0x20] sm:$0xff] }
  0x46   :  { %313 = vmatpush.bf16.msra.mxu1 %v302_v8  ;;  %v334_v22 = vpack.c.bf16 %v330_v21, %v329_v20  ;;  %v328_v24 = vld [vmem:[%s2928_s29 + $0x28] sm:$0xff]  ;;  %v325_v26 = vld [vmem:[%s2928_s29 + $0x10] sm:$0xff]  ;;  %v326_v27 = vld [vmem:[%s2928_s29 + $0x18] sm:$0xff] }
  0x47   :  { %v333_v25 = vpack.c.bf16 %v328_v24, %v327_v23  ;;  %v332_v28 = vpack.c.bf16 %v326_v27, %v325_v26  ;;  %v323_v29 = vld [vmem:[%s2928_s29] sm:$0xff]  ;;  %v324_v30 = vld [vmem:[%s2928_s29 + $0x8] sm:$0xff] }
  0x48   :  { %348 = vmatpush.bf16.msra.mxu2 %v334_v22  ;;  %v331_v31 = vpack.c.bf16 %v324_v30, %v323_v29 }
  0x4a   :  { %314 = vmatpush.bf16.msra.mxu1 %v301_v11 }
  0x4c   :  { %349 = vmatpush.bf16.msra.mxu2 %v333_v25 }
  0x50   :  { %350 = vmatpush.bf16.msra.mxu2 %v332_v28 }
  0x54   :  { %351 = vmatpush.bf16.msra.mxu2 %v331_v31 }
  0xc0   :  { %v289_v12 = vpop.f32.mrf.mxu0 }
  0xc1   :  { %v290_v14 = vadd.f32 %v1975_v13, %v289_v12 }
  0xc3   :  { %v294_v17 = vmax.f32 %v290_v14, 0.0 }
  0xc8   :  { %v291_v15 = vpop.f32.mrf.mxu0 }
  0xc9   :  { %v292_v16 = vadd.f32 %v1975_v13, %v291_v15 }
  0xcb   :  { %v295_v18 = vmax.f32 %v292_v16, 0.0 }
  0xcd   :  { %v296_v19 = vpack.c.bf16 %v295_v18, %v294_v17 }
  0xcf   :  { %1914 = vmatmul.msk.bf16.vlgmr.msra.gmra.mxu1 %vm303_vm1, %v296_v19 }
 0x14c   :  { %v316_v33 = vpop.f32.mrf.mxu1 }
 0x14d   :  { %v321_v34 = vpack.c.bf16 %v316_v33, %v316_v33 }
 0x14f   :  { %v337_v37 = vunpack.c.l.b16 %v321_v34 }
 0x154   :  { %v318_v35 = vpop.f32.mrf.mxu1 }
 0x155   :  { %v322_v36 = vpack.c.bf16 %v318_v35, %v318_v35 }
 0x157   :  { %v338_v38 = vunpack.c.l.b16 %v322_v36  ;;  %v1976_v36 = vld [vmem:[%s2929_s11] ss:$0 sm:$0xff] }
 0x159   :  { %v2653_v39 = vpack.c.b16 %v338_v38, %v337_v37 }
 0x15b   :  { %1915 = vmatmul.msk.bf16.vlgmr.msra.gmra.mxu2 %vm340_vm2, %v2653_v39  ;;  %451 = vmatpush.bf16.msra.mxu3 %v2653_v39 }
 0x1de   :  { %v353_v41 = vpop.f32.mrf.mxu2 }
 0x1df   :  { %499 = vperm.xlu1 %1959, %v353_v41   ;;  %460 = vrot.lane.b32.xlu0 %v353_v41, %s2419_s3 }
 0x1e6   :  { %v355_v42 = vpop.f32.mrf.mxu2 }
 0x1e7   :  { %503 = vperm.xlu1 %1959, %v355_v42   ;;  %462 = vrot.lane.b32.xlu0 %v355_v42, %s2419_s3 }
 0x1ef   :  { %1961 = vset.pattern.permute.xlu1 %v2418_v40  ;;  %392 = vperm.xlu0 %1960, %v353_v41  }
 0x1f0   :  { %397 = vperm.xlu1 %1961, %v355_v42  }
 0x1f8   :  { %1962 = vset.pattern.permute.xlu1 %v2417_v32 }
 0x211   :  { %358 = vxpose.xlu0.b32.start [1/2] (short) (narrow) %v353_v41, 8 }
 0x219   :  { %359 = vxpose.xlu0.b32.end [2/2] (short) (narrow) %v355_v42, 8 }
 0x251   :  { %v461_v43 = vpop.permute.xlu0 %460  ;;  %v500_v45 = vpop.permute.xlu1 %499 }
 0x252   :  { %466 = vxpose.xlu2.b32.start [1/2] (short) (narrow) %v461_v43, 8 }
 0x259   :  { %v463_v44 = vpop.permute.xlu0 %462  ;;  %v504_v46 = vpop.permute.xlu1 %503 }
 0x25a   :  { %467 = vxpose.xlu2.b32.end [2/2] (short) (narrow) %v463_v44, 8 }
 0x261   :  { %v393_v47 = vpop.permute.xlu0 %392 }
 0x262   :  { %v398_v51 = vpop.permute.xlu1 %397 }
 0x2b5   :  { %v374_v49 = vpop.trf.xlu0 }
 0x2b6   :  { %v400_v50 = vperm.slane %v374_v49, 0 }
 0x2b8   :  { %v402_v52 = vadd.f32 %v400_v50, %v398_v51  ;;  %v401_v62 = vadd.f32 %v400_v50, %v393_v47 }
 0x2ba   :  { %v406_v53 = vmul.f32 0.2, %v402_v52  ;;  %vm404_vm4 = vcmp.gt.f32.partialorder %v402_v52, 0.0  ;;  %v405_v3 = vmul.f32 0.2, %v401_v62  ;;  %vm403_vm8 = vcmp.gt.f32.partialorder %v401_v62, 0.0 }
 0x2bc   :  { %v408_v56 = vsel %vm404_vm4, %v402_v52, %v406_v53  ;;  %1963 = vset.pattern.permute.xlu2 %v2417_v32  ;;  %v407_v11 = vsel %vm403_vm8, %v401_v62, %v405_v3  ;;  %v1977_v62 = vld [vmem:[%s2929_s11] ss:$0 sm:$0xff]  ;;  %v588_v3 = vld [vmem:[#allocation9 + $0x30] sm:$0xff] }
 0x2bd   :  { %v410_v57 = vadd.f32 %v408_v56, %v2663_v55  ;;  %v409_v12 = vadd.f32 %v407_v11, %v2668_v5  ;;  %v585_v11 = vld [vmem:[#allocation9 + $0x18] sm:$0xff] }
 0x2bf   :  { %v414_v58 = vsel %vm276_vm0, %v410_v57, -inf  ;;  %v411_v13 = vsel %vm276_vm0, %v409_v12, -inf }
 0x2c0   :  { %415 = vmax.xlane.f32.xlu0 %v414_v58 }
 0x2eb   :  { %v482_v59 = vpop.trf.xlu2 }
 0x2ec   :  { %v506_v60 = vperm.slane %v482_v59, 0 }
 0x2ee   :  { %v507_v63 = vadd.f32 %v506_v60, %v500_v45  ;;  %v508_v0 = vadd.f32 %v506_v60, %v504_v46 }
 0x2f0   :  { %v511_v1 = vmul.f32 0.2, %v507_v63  ;;  %v512_v2 = vmul.f32 0.2, %v508_v0  ;;  %vm510_vm6 = vcmp.gt.f32.partialorder %v508_v0, 0.0  ;;  %vm509_vm7 = vcmp.gt.f32.partialorder %v507_v63, 0.0 }
 0x2f2   :  { %v514_v4 = vsel %vm510_vm6, %v508_v0, %v512_v2  ;;  %v513_v6 = vsel %vm509_vm7, %v507_v63, %v511_v1 }
 0x2f3   :  { %v516_v7 = vadd.f32 %v514_v4, %v2663_v55  ;;  %v515_v8 = vadd.f32 %v513_v6, %v2668_v5  ;;  %v589_v4 = vld [vmem:[#allocation9 + $0x38] sm:$0xff]  ;;  %v586_v6 = vld [vmem:[#allocation9 + $0x20] sm:$0xff] }
 0x2f5   :  { %v520_v9 = vsel %vm276_vm0, %v516_v7, -inf  ;;  %v517_v10 = vsel %vm276_vm0, %v515_v8, -inf }
 0x2f6   :  { %521 = vmax.xlane.f32.xlu1 %v520_v9  ;;  %518 = vmax.xlane.f32.xlu2 %v517_v10  ;;  %v584_v10 = vld [vmem:[#allocation9 + $0x10] sm:$0xff] }
 0x2fe   :  { %412 = vmax.xlane.f32.xlu1 %v411_v13  ;;  %v591_v13 = vpack.c.bf16 %v585_v11, %v584_v10 }
 0x333   :  { %v416_v14 = vpop.xlane.xlu0 %415 }
 0x334   :  { %v418_v15 = vsub.f32 %v410_v57, %v416_v14  ;;  %v583_v14 = vld [vmem:[#allocation9 + $0x8] sm:$0xff] }
 0x336   :  { %v421_v16 = vmul.f32 1.442695, %v418_v15 }
 0x338   :  { %1987 = vpow2.f32 %v421_v16 }
 0x33e   :  { %v1988_v17 = vpop.eup %1987 }
 0x33f   :  { %v426_v18 = vsel %vm276_vm0, %v1988_v17, 0.0 }
 0x340   :  { %427 = vadd.xlane.f32.xlu2 %v426_v18 }
 0x358   :  { %548 = vrot.lane.b32.xlu2 %v1976_v36, %s2421_s16 }
 0x369   :  { %v519_v19 = vpop.xlane.xlu2 %518  ;;  %v522_v20 = vpop.xlane.xlu1 %521 }
 0x36a   :  { %v523_v21 = vsub.f32 %v515_v8, %v519_v19  ;;  %v524_v23 = vsub.f32 %v516_v7, %v522_v20  ;;  %v593_v7 = vpack.c.bf16 %v589_v4, %v588_v3  ;;  %v587_v8 = vld [vmem:[#allocation9 + $0x28] sm:$0xff] }
 0x36b   :  { %v592_v9 = vpack.c.bf16 %v587_v8, %v586_v6 }
 0x36c   :  { %v525_v22 = vmul.f32 1.442695, %v523_v21  ;;  %v527_v24 = vmul.f32 1.442695, %v524_v23  ;;  %601 = vmatpush.bf16.msrb.mxu3 %v593_v7  ;;  %v619_v21 = vld [vmem:[#allocation11 + $0x30] sm:$0xff] }
 0x36e   :  { %1989 = vpow2.f32 %v525_v22  ;;  %v620_v22 = vld [vmem:[#allocation11 + $0x38] sm:$0xff] }
 0x36f   :  { %1991 = vpow2.f32 %v527_v24  ;;  %v624_v23 = vpack.c.bf16 %v620_v22, %v619_v21  ;;  %v617_v24 = vld [vmem:[#allocation11 + $0x20] sm:$0xff] }
 0x370   :  { %602 = vmatpush.bf16.msrb.mxu3 %v592_v9 }
 0x371   :  { %v413_v29 = vpop.xlane.xlu1 %412  ;;  %637 = vmatpush.bf16.msrb.mxu1 %v624_v23 }
 0x372   :  { %v417_v30 = vsub.f32 %v409_v12, %v413_v29  ;;  %v582_v12 = vld [vmem:[#allocation9] sm:$0xff] }
 0x373   :  { %v590_v15 = vpack.c.bf16 %v583_v14, %v582_v12 }
 0x374   :  { %v1990_v25 = vpop.eup %1989  ;;  %v419_v31 = vmul.f32 1.442695, %v417_v30  ;;  %603 = vmatpush.bf16.msrb.mxu3 %v591_v13  ;;  %v613_v30 = vld [vmem:[#allocation11] sm:$0xff] }
 0x375   :  { %v529_v26 = vsel %vm276_vm0, %v1990_v25, 0.0  ;;  %v1992_v27 = vpop.eup %1991 }
 0x376   :  { %530 = vadd.xlane.f32.xlu1 %v529_v26  ;;  %v532_v28 = vsel %vm276_vm0, %v1992_v27, 0.0  ;;  %1993 = vpow2.f32 %v419_v31  ;;  %v614_v31 = vld [vmem:[#allocation11 + $0x8] sm:$0xff] }
 0x378   :  { %604 = vmatpush.bf16.msrb.mxu3 %v590_v15 }
 0x37c   :  { %v1994_v33 = vpop.eup %1993 }
 0x37d   :  { %v423_v34 = vsel %vm276_vm0, %v1994_v33, 0.0 }
 0x37e   :  { %533 = vadd.xlane.f32.xlu1 %v532_v28  ;;  %v616_v28 = vld [vmem:[#allocation11 + $0x18] sm:$0xff] }
 0x397   :  { %545 = vrot.lane.b32.xlu1 %v2653_v39, %s2421_s16 }
 0x3b3   :  { %v428_v47 = vpop.xlane.xlu2 %427 }
 0x3b4   :  { %v430_v48 = vmax.f32 %v428_v47, 1e-20 }
 0x3bb   :  { %v549_v57 = vpop.permute.xlu2 %548 }
 0x3c1   :  { %424 = vadd.xlane.f32.xlu1 %v423_v34 }
 0x3e9   :  { %v531_v35 = vpop.xlane.xlu1 %530 }
 0x3ea   :  { %v535_v41 = vmax.f32 %v531_v35, 1e-20 }
 0x3f1   :  { %v534_v37 = vpop.xlane.xlu1 %533 }
 0x3f2   :  { %v536_v38 = vmax.f32 %v534_v37, 1e-20 }
 0x3f4   :  { %1995 = vrcp.f32 %v536_v38 }
 0x3f5   :  { %1997 = vrcp.f32 %v535_v41 }
 0x3f6   :  { %1999 = vrcp.f32 %v430_v48 }
 0x3fa   :  { %v1996_v39 = vpop.eup %1995 }
 0x3fb   :  { %v1998_v42 = vpop.eup %1997  ;;  %v540_v43 = vmul.f32 %v1996_v39, %v1992_v27  ;;  %v615_v27 = vld [vmem:[#allocation11 + $0x10] sm:$0xff] }
 0x3fc   :  { %v539_v44 = vmul.f32 %v1998_v42, %v1990_v25  ;;  %v2000_v51 = vpop.eup %1999  ;;  %v618_v25 = vld [vmem:[#allocation11 + $0x28] sm:$0xff]  ;;  %v622_v29 = vpack.c.bf16 %v616_v28, %v615_v27 }
 0x3fd   :  { %v434_v54 = vmul.f32 %v2000_v51, %v1988_v17  ;;  %v623_v26 = vpack.c.bf16 %v618_v25, %v617_v24 }
 0x3fe   :  { %v541_v46 = vpack.c.bf16 %v540_v43, %v539_v44 }
 0x3ff   :  { %638 = vmatpush.bf16.msrb.mxu1 %v623_v26 }
 0x403   :  { %639 = vmatpush.bf16.msrb.mxu1 %v622_v29 }
 0x409   :  { %v546_v45 = vpop.permute.xlu1 %545 }
 0x40a   :  { %561 = vmatpush.bf16.msrb.mxu0 %v546_v45 }
 0x40d   :  { %1917 = vmatmul.msk.bf16.vlgmr.msrb.gmra.mxu0 %vm276_vm0, %v541_v46 }
 0x434   :  { %v425_v49 = vpop.xlane.xlu1 %424 }
 0x435   :  { %v429_v50 = vmax.f32 %v425_v49, 1e-20 }
 0x437   :  { %2001 = vrcp.f32 %v429_v50 }
 0x43d   :  { %v2002_v52 = vpop.eup %2001 }
 0x43e   :  { %v433_v53 = vmul.f32 %v2002_v52, %v1994_v33  ;;  %v621_v33 = vpack.c.bf16 %v614_v31, %v613_v30 }
 0x440   :  { %v435_v56 = vpack.c.bf16 %v434_v54, %v433_v53  ;;  %640 = vmatpush.bf16.msrb.mxu1 %v621_v33 }
 0x442   :  { %1916 = vmatmul.msk.bf16.vlgmr.msra.gmra.mxu3 %vm276_vm0, %v435_v56 }
 0x48a   :  { %v563_v58 = vpop.f32.mrf.mxu0 }
 0x48b   :  { %v564_v59 = vadd.f32 %v563_v58, %v549_v57 }
 0x48d   :  { %570 = vrot.lane.b32.xlu1 %v564_v59, %s2422_s23 }
 0x492   :  { %v565_v60 = vpop.f32.mrf.mxu0 }
 0x493   :  { %v566_v61 = vadd.f32 %v565_v60, %v549_v57 }
 0x495   :  { %572 = vrot.lane.b32.xlu2 %v566_v61, %s2422_s23 }
 0x4c5   :  { %v453_v63 = vpop.f32.mrf.mxu3 }
 0x4c6   :  { %v454_v0 = vadd.f32 %v1977_v62, %v453_v63 }
 0x4c8   :  { %458 = vst.msk [vmem:[#allocation2] sm:$0xff] %vm303_vm1, %v454_v0 }
 0x4cd   :  { %v455_v1 = vpop.f32.mrf.mxu3 }
 0x4ce   :  { %v456_v2 = vadd.f32 %v1977_v62, %v455_v1 }
 0x4d0   :  { %459 = vst.msk [vmem:[#allocation2 + $0x8] sm:$0xff] %vm303_vm1, %v456_v2 }
 0x4ef   :  { %v573_v16 = vpop.permute.xlu2 %572 }
 0x4f0   :  { %578 = vst.msk [vmem:[#allocation2 + $0x8] sm:$0xff] %vm576_vm9, %v573_v16 }
 0x4f7   :  { %v580_v19 = vld [vmem:[#allocation2 + $0x8] sm:$0xff] }
 0x4ff   :  { %v571_v17 = vpop.permute.xlu1 %570 }
 0x500   :  { %577 = vst.msk [vmem:[#allocation2] sm:$0xff] %vm576_vm9, %v571_v17 }
 0x507   :  { %v579_v18 = vld [vmem:[#allocation2] sm:$0xff] }
 0x508   :  { %v581_v20 = vpack.c.bf16 %v580_v19, %v579_v18 }
 0x50a   :  { %1918 = vmatmul.msk.bf16.vlgmr.msrb.gmra.mxu3 %vm340_vm2, %v581_v20 }
 0x58d   :  { %v606_v34 = vpop.f32.mrf.mxu3 }
 0x58e   :  { %v611_v35 = vpack.c.bf16 %v606_v34, %v606_v34  ;;  %v1978_v34 = vld [vmem:[%s2899_s9] ss:$0 sm:$0xff] }
 0x590   :  { %v627_v38 = vunpack.c.l.b16 %v611_v35 }
 0x595   :  { %v608_v36 = vpop.f32.mrf.mxu3 }
 0x596   :  { %v612_v37 = vpack.c.bf16 %v608_v36, %v608_v36 }
 0x598   :  { %v628_v41 = vunpack.c.l.b16 %v612_v37 }
 0x59a   :  { %v629_v39 = vpack.c.b16 %v628_v41, %v627_v38 }
 0x59c   :  { %1919 = vmatmul.msk.bf16.vlgmr.msrb.gmra.mxu1 %vm340_vm2, %v629_v39  ;;  %740 = vmatpush.bf16.msrb.mxu2 %v629_v39 }
 0x619   :  { %v642_v42 = vpop.f32.mrf.mxu1 }
 0x61a   :  { %788 = vperm.xlu1 %1962, %v642_v42   ;;  %749 = vrot.lane.b32.xlu2 %v642_v42, %s2419_s3 }
 0x621   :  { %v644_v43 = vpop.f32.mrf.mxu1 }
 0x622   :  { %1964 = vset.pattern.permute.xlu1 %v2418_v40  ;;  %751 = vrot.lane.b32.xlu2 %v644_v43, %s2419_s3 }
 0x623   :  { %681 = vperm.xlu1 %1964, %v642_v42  }
 0x62a   :  { %792 = vperm.xlu2 %1963, %v644_v43  }
 0x632   :  { %1965 = vset.pattern.permute.xlu2 %v2418_v40 }
 0x633   :  { %686 = vperm.xlu2 %1965, %v644_v43  }
 0x63b   :  { %1966 = vset.pattern.permute.xlu2 %v2417_v32 }
 0x674   :  { %v750_v44 = vpop.permute.xlu2 %749 }
 0x675   :  { %755 = vxpose.xlu0.b32.start [1/2] (short) (narrow) %v750_v44, 8 }
 0x67c   :  { %v752_v45 = vpop.permute.xlu2 %751 }
 0x67d   :  { %756 = vxpose.xlu0.b32.end [2/2] (short) (narrow) %v752_v45, 8 }
 0x684   :  { %v793_v48 = vpop.permute.xlu2 %792 }
 0x685   :  { %647 = vxpose.xlu0.b32.start [1/2] (short) (narrow) %v642_v42, 8 }
 0x68c   :  { %v789_v49 = vpop.permute.xlu1 %788 }
 0x68d   :  { %648 = vxpose.xlu0.b32.end [2/2] (short) (narrow) %v644_v43, 8  ;;  %v687_v63 = vpop.permute.xlu2 %686 }
 0x695   :  { %v682_v0 = vpop.permute.xlu1 %681 }
 0x6fb   :  { %834 = vrot.lane.b32.xlu0 %v629_v39, %s2421_s16 }
 0x719   :  { %v771_v46 = vpop.trf.xlu0 }
 0x71a   :  { %v795_v47 = vperm.slane %v771_v46, 0 }
 0x71c   :  { %v796_v50 = vadd.f32 %v795_v47, %v789_v49  ;;  %v797_v51 = vadd.f32 %v795_v47, %v793_v48 }
 0x71e   :  { %v800_v52 = vmul.f32 0.2, %v796_v50  ;;  %v801_v53 = vmul.f32 0.2, %v797_v51  ;;  %vm798_vm10 = vcmp.gt.f32.partialorder %v796_v50, 0.0  ;;  %vm799_vm11 = vcmp.gt.f32.partialorder %v797_v51, 0.0 }
 0x720   :  { %v802_v54 = vsel %vm798_vm10, %v796_v50, %v800_v52  ;;  %v803_v56 = vsel %vm799_vm11, %v797_v51, %v801_v53 }
 0x721   :  { %v804_v57 = vadd.f32 %v802_v54, %v2668_v5  ;;  %v805_v58 = vadd.f32 %v803_v56, %v2663_v55 }
 0x723   :  { %v806_v59 = vsel %vm276_vm0, %v804_v57, -inf  ;;  %v809_v60 = vsel %vm276_vm0, %v805_v58, -inf }
 0x724   :  { %807 = vmax.xlane.f32.xlu1 %v806_v59  ;;  %810 = vmax.xlane.f32.xlu2 %v809_v60  ;;  %v1979_v60 = vld [vmem:[%s2899_s9] ss:$0 sm:$0xff] }
 0x729   :  { %v663_v61 = vpop.trf.xlu0 }
 0x72a   :  { %v689_v62 = vperm.slane %v663_v61, 0 }
 0x72c   :  { %v690_v1 = vadd.f32 %v689_v62, %v682_v0  ;;  %v691_v2 = vadd.f32 %v689_v62, %v687_v63 }
 0x72e   :  { %v694_v3 = vmul.f32 0.2, %v690_v1  ;;  %v695_v4 = vmul.f32 0.2, %v691_v2  ;;  %vm692_vm12 = vcmp.gt.f32.partialorder %v690_v1, 0.0  ;;  %vm693_vm13 = vcmp.gt.f32.partialorder %v691_v2, 0.0 }
 0x730   :  { %v696_v6 = vsel %vm692_vm12, %v690_v1, %v694_v3  ;;  %v697_v7 = vsel %vm693_vm13, %v691_v2, %v695_v4  ;;  %v876_v1 = vld [vmem:[#allocation12 + $0x30] sm:$0xff]  ;;  %v877_v2 = vld [vmem:[#allocation12 + $0x38] sm:$0xff]  ;;  %v874_v3 = vld [vmem:[#allocation12 + $0x20] sm:$0xff] }
 0x731   :  { %v698_v8 = vadd.f32 %v696_v6, %v2668_v5  ;;  %v699_v9 = vadd.f32 %v697_v7, %v2663_v55  ;;  %v881_v4 = vpack.c.bf16 %v877_v2, %v876_v1  ;;  %v875_v6 = vld [vmem:[#allocation12 + $0x28] sm:$0xff] }
 0x732   :  { %v880_v7 = vpack.c.bf16 %v875_v6, %v874_v3 }
 0x733   :  { %v700_v10 = vsel %vm276_vm0, %v698_v8, -inf  ;;  %v703_v11 = vsel %vm276_vm0, %v699_v9, -inf  ;;  %889 = vmatpush.bf16.msra.mxu3 %v881_v4 }
 0x734   :  { %701 = vmax.xlane.f32.xlu1 %v700_v10  ;;  %704 = vmax.xlane.f32.xlu2 %v703_v11  ;;  %v873_v10 = vld [vmem:[#allocation12 + $0x18] sm:$0xff]  ;;  %v870_v11 = vld [vmem:[#allocation12] sm:$0xff] }
 0x737   :  { %890 = vmatpush.bf16.msra.mxu3 %v880_v7 }
 0x76d   :  { %v835_v12 = vpop.permute.xlu0 %834 }
 0x76e   :  { %850 = vmatpush.bf16.msra.mxu0 %v835_v12 }
 0x797   :  { %v808_v13 = vpop.xlane.xlu1 %807  ;;  %v811_v14 = vpop.xlane.xlu2 %810 }
 0x798   :  { %v812_v15 = vsub.f32 %v804_v57, %v808_v13  ;;  %v813_v16 = vsub.f32 %v805_v58, %v811_v14  ;;  %v871_v13 = vld [vmem:[#allocation12 + $0x8] sm:$0xff] }
 0x799   :  { %v878_v14 = vpack.c.bf16 %v871_v13, %v870_v11 }
 0x79a   :  { %v814_v17 = vmul.f32 1.442695, %v812_v15  ;;  %v816_v18 = vmul.f32 1.442695, %v813_v16 }
 0x79c   :  { %2003 = vpow2.f32 %v814_v17 }
 0x79d   :  { %2005 = vpow2.f32 %v816_v18 }
 0x7a2   :  { %v2004_v19 = vpop.eup %2003 }
 0x7a3   :  { %v2006_v20 = vpop.eup %2005  ;;  %v818_v21 = vsel %vm276_vm0, %v2004_v19, 0.0 }
 0x7a4   :  { %819 = vadd.xlane.f32.xlu1 %v818_v21  ;;  %v821_v22 = vsel %vm276_vm0, %v2006_v20, 0.0 }
 0x7a5   :  { %822 = vadd.xlane.f32.xlu2 %v821_v22  ;;  %v905_v22 = vld [vmem:[#allocation14 + $0x20] sm:$0xff] }
 0x7a7   :  { %v702_v23 = vpop.xlane.xlu1 %701  ;;  %v705_v24 = vpop.xlane.xlu2 %704 }
 0x7a8   :  { %v706_v25 = vsub.f32 %v698_v8, %v702_v23  ;;  %v707_v26 = vsub.f32 %v699_v9, %v705_v24  ;;  %v872_v9 = vld [vmem:[#allocation12 + $0x10] sm:$0xff]  ;;  %v906_v23 = vld [vmem:[#allocation14 + $0x28] sm:$0xff] }
 0x7a9   :  { %v879_v12 = vpack.c.bf16 %v873_v10, %v872_v9  ;;  %v911_v24 = vpack.c.bf16 %v906_v23, %v905_v22 }
 0x7aa   :  { %v708_v27 = vmul.f32 1.442695, %v706_v25  ;;  %v710_v28 = vmul.f32 1.442695, %v707_v26  ;;  %v903_v25 = vld [vmem:[#allocation14 + $0x10] sm:$0xff]  ;;  %v904_v26 = vld [vmem:[#allocation14 + $0x18] sm:$0xff] }
 0x7ab   :  { %891 = vmatpush.bf16.msra.mxu3 %v879_v12 }
 0x7ac   :  { %2007 = vpow2.f32 %v708_v27  ;;  %v910_v27 = vpack.c.bf16 %v904_v26, %v903_v25 }
 0x7ad   :  { %2009 = vpow2.f32 %v710_v28  ;;  %v901_v28 = vld [vmem:[#allocation14] sm:$0xff] }
 0x7af   :  { %892 = vmatpush.bf16.msra.mxu3 %v878_v14 }
 0x7b2   :  { %v2008_v29 = vpop.eup %2007 }
 0x7b3   :  { %v2010_v30 = vpop.eup %2009  ;;  %v712_v31 = vsel %vm276_vm0, %v2008_v29, 0.0 }
 0x7b4   :  { %713 = vadd.xlane.f32.xlu1 %v712_v31  ;;  %v715_v33 = vsel %vm276_vm0, %v2010_v30, 0.0 }
 0x7b5   :  { %716 = vadd.xlane.f32.xlu2 %v715_v33 }
 0x7cd   :  { %837 = vrot.lane.b32.xlu1 %v1978_v34, %s2421_s16 }
 0x817   :  { %v820_v35 = vpop.xlane.xlu1 %819 }
 0x818   :  { %v824_v36 = vmax.f32 %v820_v35, 1e-20  ;;  %v823_v37 = vpop.xlane.xlu2 %822 }
 0x819   :  { %v825_v38 = vmax.f32 %v823_v37, 1e-20 }
 0x81a   :  { %2011 = vrcp.f32 %v824_v36 }
 0x81b   :  { %2013 = vrcp.f32 %v825_v38 }
 0x820   :  { %v2012_v41 = vpop.eup %2011 }
 0x821   :  { %v2014_v39 = vpop.eup %2013  ;;  %v828_v42 = vmul.f32 %v2012_v41, %v2004_v19  ;;  %v907_v19 = vld [vmem:[#allocation14 + $0x30] sm:$0xff] }
 0x822   :  { %v829_v43 = vmul.f32 %v2014_v39, %v2006_v20  ;;  %v908_v20 = vld [vmem:[#allocation14 + $0x38] sm:$0xff] }
 0x823   :  { %v912_v21 = vpack.c.bf16 %v908_v20, %v907_v19 }
 0x824   :  { %v830_v44 = vpack.c.bf16 %v829_v43, %v828_v42 }
 0x825   :  { %925 = vmatpush.bf16.msra.mxu1 %v912_v21 }
 0x826   :  { %1921 = vmatmul.msk.bf16.vlgmr.msra.gmra.mxu0 %vm276_vm0, %v830_v44 }
 0x827   :  { %v714_v45 = vpop.xlane.xlu1 %713 }
 0x828   :  { %v718_v46 = vmax.f32 %v714_v45, 1e-20  ;;  %v717_v47 = vpop.xlane.xlu2 %716 }
 0x829   :  { %v719_v48 = vmax.f32 %v717_v47, 1e-20  ;;  %926 = vmatpush.bf16.msra.mxu1 %v911_v24 }
 0x82a   :  { %2015 = vrcp.f32 %v718_v46 }
 0x82b   :  { %2017 = vrcp.f32 %v719_v48 }
 0x82d   :  { %927 = vmatpush.bf16.msra.mxu1 %v910_v27 }
 0x830   :  { %v2016_v49 = vpop.eup %2015 }
 0x831   :  { %v2018_v50 = vpop.eup %2017  ;;  %v722_v51 = vmul.f32 %v2016_v49, %v2008_v29  ;;  %v902_v29 = vld [vmem:[#allocation14 + $0x8] sm:$0xff] }
 0x832   :  { %v723_v52 = vmul.f32 %v2018_v50, %v2010_v30  ;;  %v909_v30 = vpack.c.bf16 %v902_v29, %v901_v28 }
 0x834   :  { %v724_v53 = vpack.c.bf16 %v723_v52, %v722_v51  ;;  %928 = vmatpush.bf16.msra.mxu1 %v909_v30 }
 0x836   :  { %1920 = vmatmul.msk.bf16.vlgmr.msrb.gmra.mxu2 %vm276_vm0, %v724_v53 }
 0x83f   :  { %v838_v54 = vpop.permute.xlu1 %837 }
 0x8a3   :  { %v852_v56 = vpop.f32.mrf.mxu0 }
 0x8a4   :  { %v853_v57 = vadd.f32 %v852_v56, %v838_v54 }
 0x8a6   :  { %859 = vrot.lane.b32.xlu2 %v853_v57, %s2422_s23 }
 0x8ab   :  { %v854_v58 = vpop.f32.mrf.mxu0 }
 0x8ac   :  { %v855_v59 = vadd.f32 %v854_v58, %v838_v54 }
 0x8ae   :  { %861 = vrot.lane.b32.xlu1 %v855_v59, %s2422_s23 }
 0x8b9   :  { %v742_v61 = vpop.f32.mrf.mxu2 }
 0x8ba   :  { %v743_v62 = vadd.f32 %v1979_v60, %v742_v61 }
 0x8bc   :  { %747 = vst.msk [vmem:[#allocation2] sm:$0xff] %vm303_vm1, %v743_v62 }
 0x8c1   :  { %v744_v63 = vpop.f32.mrf.mxu2 }
 0x8c2   :  { %v745_v0 = vadd.f32 %v1979_v60, %v744_v63 }
 0x8c4   :  { %748 = vst.msk [vmem:[#allocation2 + $0x8] sm:$0xff] %vm303_vm1, %v745_v0 }
 0x900   :  { %v860_v8 = vpop.permute.xlu2 %859 }
 0x901   :  { %865 = vst.msk [vmem:[#allocation2] sm:$0xff] %vm576_vm9, %v860_v8 }
 0x908   :  { %v867_v16 = vld [vmem:[#allocation2] sm:$0xff] }
 0x920   :  { %v862_v15 = vpop.permute.xlu1 %861 }
 0x921   :  { %866 = vst.msk [vmem:[#allocation2 + $0x8] sm:$0xff] %vm576_vm9, %v862_v15 }
 0x928   :  { %v868_v17 = vld [vmem:[#allocation2 + $0x8] sm:$0xff] }
 0x929   :  { %v869_v18 = vpack.c.bf16 %v868_v17, %v867_v16 }
 0x92b   :  { %1922 = vmatmul.msk.bf16.vlgmr.msra.gmra.mxu3 %vm340_vm2, %v869_v18 }
 0x9ae   :  { %v894_v31 = vpop.f32.mrf.mxu3 }
 0x9af   :  { %v899_v33 = vpack.c.bf16 %v894_v31, %v894_v31  ;;  %v1980_v31 = vld [vmem:[%s2902_s12] ss:$0 sm:$0xff] }
 0x9b1   :  { %v915_v36 = vunpack.c.l.b16 %v899_v33 }
 0x9b6   :  { %v896_v34 = vpop.f32.mrf.mxu3 }
 0x9b7   :  { %v900_v35 = vpack.c.bf16 %v896_v34, %v896_v34 }
 0x9b9   :  { %v916_v37 = vunpack.c.l.b16 %v900_v35 }
 0x9bb   :  { %v2733_v38 = vpack.c.b16 %v916_v37, %v915_v36 }
 0x9bd   :  { %1923 = vmatmul.msk.bf16.vlgmr.msra.gmra.mxu1 %vm340_vm2, %v2733_v38  ;;  %1028 = vmatpush.bf16.msra.mxu2 %v2733_v38 }
 0xa3a   :  { %v930_v41 = vpop.f32.mrf.mxu1 }
 0xa3b   :  { %935 = vxpose.xlu0.b32.start [1/2] (short) (narrow) %v930_v41, 8  ;;  %1037 = vrot.lane.b32.xlu2 %v930_v41, %s2419_s3 }
 0xa42   :  { %v932_v39 = vpop.f32.mrf.mxu1 }
 0xa43   :  { %1076 = vperm.xlu2 %1966, %v930_v41   ;;  %936 = vxpose.xlu0.b32.end [2/2] (short) (narrow) %v932_v39, 8 }
 0xa44   :  { %1039 = vrot.lane.b32.xlu1 %v932_v39, %s2419_s3 }
 0xa4c   :  { %969 = vperm.xlu1 %1964, %v930_v41  }
 0xa54   :  { %1967 = vset.pattern.permute.xlu1 %v2417_v32 }
 0xa55   :  { %1080 = vperm.xlu1 %1967, %v932_v39  }
 0xa5d   :  { %1968 = vset.pattern.permute.xlu1 %v2418_v40 }
 0xa5e   :  { %974 = vperm.xlu1 %1968, %v932_v39  }
 0xa66   :  { %1969 = vset.pattern.permute.xlu1 %v2417_v32 }
 0xa95   :  { %v1038_v42 = vpop.permute.xlu2 %1037 }
 0xa96   :  { %1043 = vxpose.xlu2.b32.start [1/2] (short) (narrow) %v1038_v42, 8 }
 0xa9d   :  { %v1077_v45 = vpop.permute.xlu2 %1076 }
 0xab6   :  { %v1040_v43 = vpop.permute.xlu1 %1039 }
 0xab7   :  { %1044 = vxpose.xlu2.b32.end [2/2] (short) (narrow) %v1040_v43, 8 }
 0xabe   :  { %v970_v44 = vpop.permute.xlu1 %969 }
 0xac7   :  { %v1081_v48 = vpop.permute.xlu1 %1080 }
 0xad0   :  { %v975_v62 = vpop.permute.xlu1 %974 }
 0xadf   :  { %v951_v46 = vpop.trf.xlu0 }
 0xae0   :  { %v977_v47 = vperm.slane %v951_v46, 0 }
 0xae2   :  { %v978_v51 = vadd.f32 %v977_v47, %v970_v44  ;;  %v979_v1 = vadd.f32 %v977_v47, %v975_v62 }
 0xae4   :  { %v982_v57 = vmul.f32 0.2, %v978_v51  ;;  %vm980_vm3 = vcmp.gt.f32.partialorder %v978_v51, 0.0  ;;  %v983_v4 = vmul.f32 0.2, %v979_v1  ;;  %vm981_vm4 = vcmp.gt.f32.partialorder %v979_v1, 0.0 }
 0xae6   :  { %v984_v2 = vsel %vm980_vm3, %v978_v51, %v982_v57  ;;  %v985_v7 = vsel %vm981_vm4, %v979_v1, %v983_v4  ;;  %v1162_v1 = vld [vmem:[#allocation15 + $0x20] sm:$0xff] }
 0xae7   :  { %v986_v3 = vadd.f32 %v984_v2, %v2668_v5  ;;  %v987_v8 = vadd.f32 %v985_v7, %v2663_v55  ;;  %v1161_v7 = vld [vmem:[#allocation15 + $0x18] sm:$0xff] }
 0xae9   :  { %v988_v6 = vsel %vm276_vm0, %v986_v3, -inf  ;;  %v991_v9 = vsel %vm276_vm0, %v987_v8, -inf }
 0xb19   :  { %1970 = vset.pattern.permute.xlu2 %v2418_v40 }
 0xb48   :  { %v1059_v49 = vpop.trf.xlu2 }
 0xb49   :  { %v1083_v50 = vperm.slane %v1059_v49, 0 }
 0xb4b   :  { %v1084_v52 = vadd.f32 %v1083_v50, %v1077_v45  ;;  %v1085_v53 = vadd.f32 %v1083_v50, %v1081_v48 }
 0xb4d   :  { %v1088_v54 = vmul.f32 0.2, %v1084_v52  ;;  %v1089_v56 = vmul.f32 0.2, %v1085_v53  ;;  %vm1086_vm14 = vcmp.gt.f32.partialorder %v1084_v52, 0.0  ;;  %vm1087_vm15 = vcmp.gt.f32.partialorder %v1085_v53, 0.0 }
 0xb4f   :  { %v1090_v58 = vsel %vm1086_vm14, %v1084_v52, %v1088_v54  ;;  %v1091_v59 = vsel %vm1087_vm15, %v1085_v53, %v1089_v56 }
 0xb50   :  { %v1092_v60 = vadd.f32 %v1090_v58, %v2668_v5  ;;  %v1093_v61 = vadd.f32 %v1091_v59, %v2663_v55  ;;  %v1981_v58 = vld [vmem:[%s2902_s12] ss:$0 sm:$0xff]  ;;  %s1892_s12 = sshll.u32 %s2423_s17, 4  ;;  %s1893_s12 = int_to_ptr.vmem [resolvable:$true] %s1892_s12 }
 0xb52   :  { %v1094_v63 = vsel %vm276_vm0, %v1092_v60, -inf  ;;  %v1097_v0 = vsel %vm276_vm0, %v1093_v61, -inf }
 0xb53   :  { %1095 = vmax.xlane.f32.xlu1 %v1094_v63  ;;  %1098 = vmax.xlane.f32.xlu2 %v1097_v0  ;;  %v1164_v63 = vld [vmem:[#allocation15 + $0x30] sm:$0xff]  ;;  %v1165_v0 = vld [vmem:[#allocation15 + $0x38] sm:$0xff] }
 0xb54   :  { %v1169_v2 = vpack.c.bf16 %v1165_v0, %v1164_v63 }
 0xb56   :  { %1177 = vmatpush.bf16.msrb.mxu3 %v1169_v2 }
 0xb5b   :  { %989 = vmax.xlane.f32.xlu1 %v988_v6  ;;  %v1160_v6 = vld [vmem:[#allocation15 + $0x10] sm:$0xff] }
 0xb63   :  { %992 = vmax.xlane.f32.xlu1 %v991_v9  ;;  %v1167_v9 = vpack.c.bf16 %v1161_v7, %v1160_v6 }
 0xb6b   :  { %1125 = vrot.lane.b32.xlu2 %v1980_v31, %s2421_s16 }
 0xbc6   :  { %v1096_v10 = vpop.xlane.xlu1 %1095  ;;  %v1099_v11 = vpop.xlane.xlu2 %1098 }
 0xbc7   :  { %v1100_v12 = vsub.f32 %v1092_v60, %v1096_v10  ;;  %v1101_v14 = vsub.f32 %v1093_v61, %v1099_v11  ;;  %v1159_v10 = vld [vmem:[#allocation15 + $0x8] sm:$0xff] }
 0xbc9   :  { %v1102_v13 = vmul.f32 1.442695, %v1100_v12  ;;  %v1104_v15 = vmul.f32 1.442695, %v1101_v14 }
 0xbcb   :  { %2019 = vpow2.f32 %v1102_v13 }
 0xbcc   :  { %2021 = vpow2.f32 %v1104_v15 }
 0xbce   :  { %v990_v16 = vpop.xlane.xlu1 %989  ;;  %v1126_v52 = vpop.permute.xlu2 %1125 }
 0xbcf   :  { %v994_v17 = vsub.f32 %v986_v3, %v990_v16  ;;  %v1163_v3 = vld [vmem:[#allocation15 + $0x28] sm:$0xff] }
 0xbd0   :  { %v1168_v4 = vpack.c.bf16 %v1163_v3, %v1162_v1 }
 0xbd1   :  { %v996_v18 = vmul.f32 1.442695, %v994_v17  ;;  %v2020_v19 = vpop.eup %2019  ;;  %v1195_v17 = vld [vmem:[#allocation17 + $0x30] sm:$0xff] }
 0xbd2   :  { %v1106_v20 = vsel %vm276_vm0, %v2020_v19, 0.0  ;;  %v2022_v21 = vpop.eup %2021  ;;  %1178 = vmatpush.bf16.msrb.mxu3 %v1168_v4 }
 0xbd3   :  { %2023 = vpow2.f32 %v996_v18  ;;  %1107 = vadd.xlane.f32.xlu1 %v1106_v20  ;;  %v1109_v24 = vsel %vm276_vm0, %v2022_v21, 0.0  ;;  %v1196_v18 = vld [vmem:[#allocation17 + $0x38] sm:$0xff]  ;;  %v1193_v20 = vld [vmem:[#allocation17 + $0x20] sm:$0xff] }
 0xbd6   :  { %v993_v25 = vpop.xlane.xlu1 %992  ;;  %1179 = vmatpush.bf16.msrb.mxu3 %v1167_v9 }
 0xbd7   :  { %v995_v26 = vsub.f32 %v987_v8, %v993_v25  ;;  %v1158_v8 = vld [vmem:[#allocation15] sm:$0xff] }
 0xbd8   :  { %v1166_v11 = vpack.c.bf16 %v1159_v10, %v1158_v8 }
 0xbd9   :  { %v2024_v22 = vpop.eup %2023  ;;  %v998_v27 = vmul.f32 1.442695, %v995_v26  ;;  %v1189_v26 = vld [vmem:[#allocation17] sm:$0xff] }
 0xbda   :  { %v1000_v23 = vsel %vm276_vm0, %v2024_v22, 0.0  ;;  %1180 = vmatpush.bf16.msrb.mxu3 %v1166_v11 }
 0xbdb   :  { %1001 = vadd.xlane.f32.xlu0 %v1000_v23  ;;  %1110 = vadd.xlane.f32.xlu1 %v1109_v24  ;;  %2025 = vpow2.f32 %v998_v27  ;;  %v1191_v23 = vld [vmem:[#allocation17 + $0x10] sm:$0xff]  ;;  %v1192_v24 = vld [vmem:[#allocation17 + $0x18] sm:$0xff]  ;;  %v1190_v27 = vld [vmem:[#allocation17 + $0x8] sm:$0xff] }
 0xbdc   :  { %v1198_v25 = vpack.c.bf16 %v1192_v24, %v1191_v23 }
 0xbe1   :  { %v2026_v28 = vpop.eup %2025 }
 0xbe2   :  { %v1003_v29 = vsel %vm276_vm0, %v2026_v28, 0.0 }
 0xbf4   :  { %1122 = vrot.lane.b32.xlu1 %v2733_v38, %s2421_s16 }
 0xc1e   :  { %1004 = vadd.xlane.f32.xlu1 %v1003_v29 }
 0xc46   :  { %v1108_v30 = vpop.xlane.xlu1 %1107 }
 0xc47   :  { %v1112_v35 = vmax.f32 %v1108_v30, 1e-20 }
 0xc4e   :  { %v1111_v33 = vpop.xlane.xlu1 %1110  ;;  %v1002_v43 = vpop.xlane.xlu0 %1001 }
 0xc4f   :  { %v1113_v34 = vmax.f32 %v1111_v33, 1e-20  ;;  %v1006_v44 = vmax.f32 %v1002_v43, 1e-20 }
 0xc51   :  { %2027 = vrcp.f32 %v1113_v34 }
 0xc52   :  { %2029 = vrcp.f32 %v1112_v35 }
 0xc53   :  { %2031 = vrcp.f32 %v1006_v44 }
 0xc57   :  { %v2028_v36 = vpop.eup %2027 }
 0xc58   :  { %v2030_v37 = vpop.eup %2029  ;;  %v1117_v38 = vmul.f32 %v2028_v36, %v2022_v21  ;;  %v1194_v21 = vld [vmem:[#allocation17 + $0x28] sm:$0xff] }
 0xc59   :  { %v1116_v41 = vmul.f32 %v2030_v37, %v2020_v19  ;;  %v2032_v47 = vpop.eup %2031  ;;  %v1200_v19 = vpack.c.bf16 %v1196_v18, %v1195_v17 }
 0xc5a   :  { %v1010_v49 = vmul.f32 %v2032_v47, %v2024_v22  ;;  %v1199_v22 = vpack.c.bf16 %v1194_v21, %v1193_v20 }
 0xc5b   :  { %v1118_v42 = vpack.c.bf16 %v1117_v38, %v1116_v41  ;;  %1213 = vmatpush.bf16.msrb.mxu1 %v1200_v19 }
 0xc5f   :  { %1214 = vmatpush.bf16.msrb.mxu1 %v1199_v22 }
 0xc63   :  { %1215 = vmatpush.bf16.msrb.mxu1 %v1198_v25 }
 0xc66   :  { %v1123_v39 = vpop.permute.xlu1 %1122 }
 0xc67   :  { %1138 = vmatpush.bf16.msrb.mxu0 %v1123_v39 }
 0xc6a   :  { %1925 = vmatmul.msk.bf16.vlgmr.msrb.gmra.mxu0 %vm276_vm0, %v1118_v42 }
 0xc91   :  { %v1005_v45 = vpop.xlane.xlu1 %1004 }
 0xc92   :  { %v1007_v46 = vmax.f32 %v1005_v45, 1e-20 }
 0xc94   :  { %2033 = vrcp.f32 %v1007_v46 }
 0xc9a   :  { %v2034_v48 = vpop.eup %2033 }
 0xc9b   :  { %v1011_v50 = vmul.f32 %v2034_v48, %v2026_v28  ;;  %v1197_v28 = vpack.c.bf16 %v1190_v27, %v1189_v26 }
 0xc9d   :  { %v1012_v51 = vpack.c.bf16 %v1011_v50, %v1010_v49  ;;  %1216 = vmatpush.bf16.msrb.mxu1 %v1197_v28 }
 0xc9f   :  { %1924 = vmatmul.msk.bf16.vlgmr.msra.gmra.mxu2 %vm276_vm0, %v1012_v51 }
 0xce7   :  { %v1140_v53 = vpop.f32.mrf.mxu0 }
 0xce8   :  { %v1141_v54 = vadd.f32 %v1140_v53, %v1126_v52 }
 0xcea   :  { %1147 = vrot.lane.b32.xlu1 %v1141_v54, %s2422_s23 }
 0xcef   :  { %v1142_v56 = vpop.f32.mrf.mxu0 }
 0xcf0   :  { %v1143_v57 = vadd.f32 %v1142_v56, %v1126_v52 }
 0xcf2   :  { %1149 = vrot.lane.b32.xlu2 %v1143_v57, %s2422_s23 }
 0xd22   :  { %v1030_v59 = vpop.f32.mrf.mxu2 }
 0xd23   :  { %v1031_v60 = vadd.f32 %v1981_v58, %v1030_v59 }
 0xd25   :  { %1035 = vst.msk [vmem:[#allocation2] sm:$0xff] %vm303_vm1, %v1031_v60 }
 0xd2a   :  { %v1032_v61 = vpop.f32.mrf.mxu2 }
 0xd2b   :  { %v1033_v62 = vadd.f32 %v1981_v58, %v1032_v61 }
 0xd2d   :  { %1036 = vst.msk [vmem:[#allocation2 + $0x8] sm:$0xff] %vm303_vm1, %v1033_v62 }
 0xd4c   :  { %v1150_v12 = vpop.permute.xlu2 %1149 }
 0xd4d   :  { %1154 = vst.msk [vmem:[#allocation2 + $0x8] sm:$0xff] %vm576_vm9, %v1150_v12 }
 0xd54   :  { %v1156_v15 = vld [vmem:[#allocation2 + $0x8] sm:$0xff] }
 0xd5c   :  { %v1148_v13 = vpop.permute.xlu1 %1147 }
 0xd5d   :  { %1153 = vst.msk [vmem:[#allocation2] sm:$0xff] %vm576_vm9, %v1148_v13 }
 0xd64   :  { %v1155_v14 = vld [vmem:[#allocation2] sm:$0xff] }
 0xd65   :  { %v1157_v16 = vpack.c.bf16 %v1156_v15, %v1155_v14 }
 0xd67   :  { %1926 = vmatmul.msk.bf16.vlgmr.msrb.gmra.mxu3 %vm340_vm2, %v1157_v16 }
 0xdea   :  { %v1182_v29 = vpop.f32.mrf.mxu3 }
 0xdeb   :  { %v1187_v30 = vpack.c.bf16 %v1182_v29, %v1182_v29 }
 0xded   :  { %v1203_v34 = vunpack.c.l.b16 %v1187_v30 }
 0xdf2   :  { %v1184_v31 = vpop.f32.mrf.mxu3 }
 0xdf3   :  { %v1188_v33 = vpack.c.bf16 %v1184_v31, %v1184_v31  ;;  %v1982_v31 = vld [vmem:[%s2905_s15] ss:$0 sm:$0xff] }
 0xdf5   :  { %v1204_v35 = vunpack.c.l.b16 %v1188_v33 }
 0xdf7   :  { %v2774_v36 = vpack.c.b16 %v1204_v35, %v1203_v34 }
 0xdf9   :  { %1927 = vmatmul.msk.bf16.vlgmr.msrb.gmra.mxu1 %vm340_vm2, %v2774_v36  ;;  %1316 = vmatpush.bf16.msrb.mxu2 %v2774_v36 }
 0xe76   :  { %v1218_v37 = vpop.f32.mrf.mxu1 }
 0xe77   :  { %1257 = vperm.xlu2 %1970, %v1218_v37   ;;  %1325 = vrot.lane.b32.xlu1 %v1218_v37, %s2419_s3 }
 0xe7e   :  { %v1220_v38 = vpop.f32.mrf.mxu1 }
 0xe7f   :  { %1364 = vperm.xlu1 %1969, %v1218_v37   ;;  %1262 = vperm.xlu0 %1960, %v1220_v38  }
 0xe80   :  { %1327 = vrot.lane.b32.xlu2 %v1220_v38, %s2419_s3 }
 0xe81   :  { %1971 = vset.pattern.permute.xlu2 %v2417_v32 }
 0xe87   :  { %1972 = vset.pattern.permute.xlu0 %v2417_v32 }
 0xe88   :  { %1368 = vperm.xlu2 %1971, %v1220_v38  }
 0xed1   :  { %v1258_v41 = vpop.permute.xlu2 %1257 }
 0xeda   :  { %v1328_v42 = vpop.permute.xlu2 %1327 }
 0xee2   :  { %v1369_v46 = vpop.permute.xlu2 %1368 }
 0xee9   :  { %v1326_v39 = vpop.permute.xlu1 %1325 }
 0xeea   :  { %1331 = vxpose.xlu1.b32.start [1/2] (short) (narrow) %v1326_v39, 8 }
 0xef1   :  { %v1365_v43 = vpop.permute.xlu1 %1364  ;;  %v1263_v58 = vpop.permute.xlu0 %1262 }
 0xef2   :  { %1332 = vxpose.xlu1.b32.end [2/2] (short) (narrow) %v1328_v42, 8 }
 0xf8e   :  { %v1347_v44 = vpop.trf.xlu1 }
 0xf8f   :  { %v1371_v45 = vperm.slane %v1347_v44, 0 }
 0xf91   :  { %v1372_v47 = vadd.f32 %v1371_v45, %v1365_v43  ;;  %v1373_v48 = vadd.f32 %v1371_v45, %v1369_v46 }
 0xf93   :  { %v1376_v49 = vmul.f32 0.2, %v1372_v47  ;;  %v1377_v50 = vmul.f32 0.2, %v1373_v48  ;;  %vm1374_vm5 = vcmp.gt.f32.partialorder %v1372_v47, 0.0  ;;  %vm1375_vm6 = vcmp.gt.f32.partialorder %v1373_v48, 0.0 }
 0xf95   :  { %v1378_v51 = vsel %vm1374_vm5, %v1372_v47, %v1376_v49  ;;  %v1379_v52 = vsel %vm1375_vm6, %v1373_v48, %v1377_v50 }
 0xf96   :  { %v1380_v32 = vadd.f32 %v1378_v51, %v2668_v5  ;;  %v1381_v53 = vadd.f32 %v1379_v52, %v2663_v55 }
 0xf98   :  { %v1382_v54 = vsel %vm276_vm0, %v1380_v32, -inf  ;;  %v1385_v56 = vsel %vm276_vm0, %v1381_v53, -inf }
 0xf99   :  { %1383 = vmax.xlane.f32.xlu2 %v1382_v54  ;;  %1386 = vmax.xlane.f32.xlu0 %v1385_v56  ;;  %v1453_v54 = vld [vmem:[#allocation18 + $0x38] sm:$0xff] }
 0xfc2   :  { %1223 = vxpose.xlu2.b32.start [1/2] (short) (narrow) %v1218_v37, 8 }
 0xfca   :  { %1224 = vxpose.xlu2.b32.end [2/2] (short) (narrow) %v1220_v38, 8 }
0x100c   :  { %v1384_v57 = vpop.xlane.xlu2 %1383  ;;  %v1387_v3 = vpop.xlane.xlu0 %1386 }
0x100d   :  { %v1388_v59 = vsub.f32 %v1380_v32, %v1384_v57  ;;  %v1389_v9 = vsub.f32 %v1381_v53, %v1387_v3  ;;  %v1452_v53 = vld [vmem:[#allocation18 + $0x30] sm:$0xff]  ;;  %v1450_v57 = vld [vmem:[#allocation18 + $0x20] sm:$0xff] }
0x100e   :  { %v1457_v56 = vpack.c.bf16 %v1453_v54, %v1452_v53 }
0x100f   :  { %v1390_v0 = vmul.f32 1.442695, %v1388_v59  ;;  %v1392_v12 = vmul.f32 1.442695, %v1389_v9 }
0x1010   :  { %1465 = vmatpush.bf16.msra.mxu3 %v1457_v56 }
0x1011   :  { %2035 = vpow2.f32 %v1390_v0  ;;  %v1447_v0 = vld [vmem:[#allocation18 + $0x8] sm:$0xff] }
0x1012   :  { %2037 = vpow2.f32 %v1392_v12 }
0x1017   :  { %v2036_v13 = vpop.eup %2035 }
0x1018   :  { %v1394_v14 = vsel %vm276_vm0, %v2036_v13, 0.0  ;;  %v2038_v15 = vpop.eup %2037 }
0x1019   :  { %v1397_v16 = vsel %vm276_vm0, %v2038_v15, 0.0 }
0x102c   :  { %1974 = vset.pattern.permute.xlu2 %v2418_v40 }
0x105b   :  { %v1239_v60 = vpop.trf.xlu2 }
0x105c   :  { %v1265_v61 = vperm.slane %v1239_v60, 0  ;;  %v1448_v60 = vld [vmem:[#allocation18 + $0x10] sm:$0xff] }
0x105e   :  { %v1266_v62 = vadd.f32 %v1265_v61, %v1258_v41  ;;  %v1267_v63 = vadd.f32 %v1265_v61, %v1263_v58  ;;  %v1451_v58 = vld [vmem:[#allocation18 + $0x28] sm:$0xff]  ;;  %v1449_v61 = vld [vmem:[#allocation18 + $0x18] sm:$0xff] }
0x105f   :  { %v1456_v59 = vpack.c.bf16 %v1451_v58, %v1450_v57 }
0x1060   :  { %v1270_v1 = vmul.f32 0.2, %v1266_v62  ;;  %v1271_v2 = vmul.f32 0.2, %v1267_v63  ;;  %vm1269_vm7 = vcmp.gt.f32.partialorder %v1267_v63, 0.0  ;;  %vm1268_vm8 = vcmp.gt.f32.partialorder %v1266_v62, 0.0 }
0x1061   :  { %1466 = vmatpush.bf16.msra.mxu3 %v1456_v59 }
0x1062   :  { %v1273_v4 = vsel %vm1269_vm7, %v1267_v63, %v1271_v2  ;;  %v1272_v6 = vsel %vm1268_vm8, %v1266_v62, %v1270_v1  ;;  %v1455_v62 = vpack.c.bf16 %v1449_v61, %v1448_v60  ;;  %v1446_v63 = vld [vmem:[#allocation18] sm:$0xff] }
0x1063   :  { %v1275_v7 = vadd.f32 %v1273_v4, %v2663_v55  ;;  %v1274_v8 = vadd.f32 %v1272_v6, %v2668_v5  ;;  %v1454_v1 = vpack.c.bf16 %v1447_v0, %v1446_v63  ;;  %v1983_v2 = vld [vmem:[%s2905_s15] ss:$0 sm:$0xff] }
0x1065   :  { %v1279_v10 = vsel %vm276_vm0, %v1275_v7, -inf  ;;  %v1276_v11 = vsel %vm276_vm0, %v1274_v8, -inf  ;;  %1467 = vmatpush.bf16.msra.mxu3 %v1455_v62 }
0x1066   :  { %1280 = vmax.xlane.f32.xlu0 %v1279_v10  ;;  %1277 = vmax.xlane.f32.xlu1 %v1276_v11 }
0x1069   :  { %1468 = vmatpush.bf16.msra.mxu3 %v1454_v1 }
0x106e   :  { %1395 = vadd.xlane.f32.xlu0 %v1394_v14  ;;  %v1484_v14 = vld [vmem:[#allocation20 + $0x38] sm:$0xff] }
0x1076   :  { %1398 = vadd.xlane.f32.xlu0 %v1397_v16  ;;  %v1481_v16 = vld [vmem:[#allocation20 + $0x20] sm:$0xff] }
0x108a   :  { %1410 = vrot.lane.b32.xlu0 %v2774_v36, %s2421_s16 }
0x10d9   :  { %v1281_v17 = vpop.xlane.xlu0 %1280  ;;  %v1278_v18 = vpop.xlane.xlu1 %1277 }
0x10da   :  { %v1283_v19 = vsub.f32 %v1275_v7, %v1281_v17  ;;  %v1282_v20 = vsub.f32 %v1274_v8, %v1278_v18  ;;  %v1482_v17 = vld [vmem:[#allocation20 + $0x28] sm:$0xff] }
0x10db   :  { %v1487_v18 = vpack.c.bf16 %v1482_v17, %v1481_v16 }
0x10dc   :  { %v1286_v21 = vmul.f32 1.442695, %v1283_v19  ;;  %v1284_v22 = vmul.f32 1.442695, %v1282_v20  ;;  %v1479_v19 = vld [vmem:[#allocation20 + $0x10] sm:$0xff]  ;;  %v1480_v20 = vld [vmem:[#allocation20 + $0x18] sm:$0xff] }
0x10de   :  { %2039 = vpow2.f32 %v1286_v21  ;;  %v1486_v21 = vpack.c.bf16 %v1480_v20, %v1479_v19 }
0x10df   :  { %2041 = vpow2.f32 %v1284_v22  ;;  %v1477_v22 = vld [vmem:[#allocation20] sm:$0xff] }
0x10e1   :  { %v1396_v23 = vpop.xlane.xlu0 %1395 }
0x10e2   :  { %v1400_v30 = vmax.f32 %v1396_v23, 1e-20  ;;  %v1478_v23 = vld [vmem:[#allocation20 + $0x8] sm:$0xff] }
0x10e4   :  { %v2040_v24 = vpop.eup %2039 }
0x10e5   :  { %v2042_v25 = vpop.eup %2041  ;;  %v1291_v26 = vsel %vm276_vm0, %v2040_v24, 0.0 }
0x10e6   :  { %1292 = vadd.xlane.f32.xlu0 %v1291_v26  ;;  %v1288_v27 = vsel %vm276_vm0, %v2042_v25, 0.0 }
0x10e7   :  { %1289 = vadd.xlane.f32.xlu2 %v1288_v27 }
0x10e9   :  { %v1399_v28 = vpop.xlane.xlu0 %1398 }
0x10ea   :  { %v1401_v29 = vmax.f32 %v1399_v28, 1e-20 }
0x10ec   :  { %2043 = vrcp.f32 %v1401_v29 }
0x10ed   :  { %2045 = vrcp.f32 %v1400_v30 }
0x10f2   :  { %v2044_v33 = vpop.eup %2043 }
0x10f3   :  { %v2046_v34 = vpop.eup %2045  ;;  %v1405_v35 = vmul.f32 %v2044_v33, %v2038_v15 }
0x10f4   :  { %v1404_v36 = vmul.f32 %v2046_v34, %v2036_v13  ;;  %v1483_v13 = vld [vmem:[#allocation20 + $0x30] sm:$0xff] }
0x10f5   :  { %v1488_v15 = vpack.c.bf16 %v1484_v14, %v1483_v13 }
0x10f6   :  { %v1406_v38 = vpack.c.bf16 %v1405_v35, %v1404_v36 }
0x10f7   :  { %1501 = vmatpush.bf16.msra.mxu1 %v1488_v15 }
0x10fa   :  { %1413 = vrot.lane.b32.xlu0 %v1982_v31, %s2421_s16 }
0x10fb   :  { %1502 = vmatpush.bf16.msra.mxu1 %v1487_v18 }
0x10fc   :  { %v1411_v37 = vpop.permute.xlu0 %1410 }
0x10fd   :  { %1426 = vmatpush.bf16.msra.mxu0 %v1411_v37 }
0x10ff   :  { %1503 = vmatpush.bf16.msra.mxu1 %v1486_v21 }
0x1100   :  { %1929 = vmatmul.msk.bf16.vlgmr.msra.gmra.mxu0 %vm276_vm0, %v1406_v38 }
0x1159   :  { %v1293_v41 = vpop.xlane.xlu0 %1292 }
0x115a   :  { %v1295_v39 = vmax.f32 %v1293_v41, 1e-20  ;;  %v1290_v42 = vpop.xlane.xlu2 %1289 }
0x115b   :  { %v1294_v43 = vmax.f32 %v1290_v42, 1e-20 }
0x115c   :  { %2047 = vrcp.f32 %v1295_v39 }
0x115d   :  { %2049 = vrcp.f32 %v1294_v43 }
0x1162   :  { %v2048_v44 = vpop.eup %2047 }
0x1163   :  { %v2050_v45 = vpop.eup %2049  ;;  %v1299_v46 = vmul.f32 %v2048_v44, %v2040_v24  ;;  %v1485_v24 = vpack.c.bf16 %v1478_v23, %v1477_v22  ;;  %v1984_v23 = vld [vmem:[%s2908_s18] ss:$0 sm:$0xff] }
0x1164   :  { %v1298_v47 = vmul.f32 %v2050_v45, %v2042_v25 }
0x1165   :  { %1504 = vmatpush.bf16.msra.mxu1 %v1485_v24 }
0x1166   :  { %v1300_v48 = vpack.c.bf16 %v1299_v46, %v1298_v47 }
0x1168   :  { %1928 = vmatmul.msk.bf16.vlgmr.msrb.gmra.mxu2 %vm276_vm0, %v1300_v48 }
0x116c   :  { %v1414_v49 = vpop.permute.xlu0 %1413 }
0x117d   :  { %v1428_v50 = vpop.f32.mrf.mxu0 }
0x117e   :  { %v1429_v51 = vadd.f32 %v1428_v50, %v1414_v49 }
0x1180   :  { %1435 = vrot.lane.b32.xlu1 %v1429_v51, %s2422_s23 }
0x1185   :  { %v1430_v52 = vpop.f32.mrf.mxu0 }
0x1186   :  { %v1431_v32 = vadd.f32 %v1430_v52, %v1414_v49 }
0x1188   :  { %1437 = vrot.lane.b32.xlu0 %v1431_v32, %s2422_s23 }
0x11eb   :  { %v1318_v3 = vpop.f32.mrf.mxu2 }
0x11ec   :  { %v1319_v4 = vadd.f32 %v1983_v2, %v1318_v3 }
0x11ee   :  { %1323 = vst.msk [vmem:[#allocation2] sm:$0xff] %vm303_vm1, %v1319_v4 }
0x11f2   :  { %v1436_v6 = vpop.permute.xlu1 %1435 }
0x11f3   :  { %v1320_v7 = vpop.f32.mrf.mxu2  ;;  %1441 = vst.msk [vmem:[#allocation2] sm:$0xff] %vm576_vm9, %v1436_v6 }
0x11f4   :  { %v1321_v8 = vadd.f32 %v1983_v2, %v1320_v7 }
0x11f6   :  { %1324 = vst.msk [vmem:[#allocation2 + $0x8] sm:$0xff] %vm303_vm1, %v1321_v8 }
0x11fa   :  { %v1438_v9 = vpop.permute.xlu0 %1437  ;;  %v1443_v10 = vld [vmem:[#allocation2] sm:$0xff] }
0x11fb   :  { %1442 = vst.msk [vmem:[#allocation2 + $0x8] sm:$0xff] %vm576_vm9, %v1438_v9 }
0x1202   :  { %v1444_v11 = vld [vmem:[#allocation2 + $0x8] sm:$0xff] }
0x1203   :  { %v1445_v12 = vpack.c.bf16 %v1444_v11, %v1443_v10 }
0x1205   :  { %1930 = vmatmul.msk.bf16.vlgmr.msra.gmra.mxu3 %vm340_vm2, %v1445_v12 }
0x1288   :  { %v1470_v25 = vpop.f32.mrf.mxu3 }
0x1289   :  { %v1475_v26 = vpack.c.bf16 %v1470_v25, %v1470_v25 }
0x128b   :  { %v1491_v29 = vunpack.c.l.b16 %v1475_v26 }
0x1290   :  { %v1472_v27 = vpop.f32.mrf.mxu3 }
0x1291   :  { %v1476_v28 = vpack.c.bf16 %v1472_v27, %v1472_v27 }
0x1293   :  { %v1492_v30 = vunpack.c.l.b16 %v1476_v28 }
0x1295   :  { %v1493_v31 = vpack.c.b16 %v1492_v30, %v1491_v29 }
0x1297   :  { %1931 = vmatmul.msk.bf16.vlgmr.msra.gmra.mxu1 %vm340_vm2, %v1493_v31  ;;  %1604 = vmatpush.bf16.msra.mxu2 %v1493_v31 }
0x1314   :  { %v1506_v33 = vpop.f32.mrf.mxu1 }
0x1315   :  { %1613 = vrot.lane.b32.xlu0 %v1506_v33, %s2419_s3 }
0x131c   :  { %v1508_v34 = vpop.f32.mrf.mxu1 }
0x131d   :  { %1652 = vperm.xlu0 %1972, %v1506_v33   ;;  %1550 = vperm.xlu2 %1974, %v1508_v34  }
0x131e   :  { %1615 = vrot.lane.b32.xlu1 %v1508_v34, %s2419_s3 }
0x1325   :  { %1973 = vset.pattern.permute.xlu0 %v2418_v40 }
0x1326   :  { %1656 = vperm.xlu1 %1969, %v1508_v34   ;;  %1545 = vperm.xlu0 %1973, %v1506_v33  }
0x1377   :  { %v1551_v32 = vpop.permute.xlu2 %1550 }
0x1387   :  { %v1614_v35 = vpop.permute.xlu0 %1613 }
0x1388   :  { %1619 = vxpose.xlu1.b32.start [1/2] (short) (narrow) %v1614_v35, 8 }
0x138f   :  { %v1653_v39 = vpop.permute.xlu0 %1652 }
0x1390   :  { %v1616_v36 = vpop.permute.xlu1 %1615 }
0x1391   :  { %1620 = vxpose.xlu1.b32.end [2/2] (short) (narrow) %v1616_v36, 8 }
0x1398   :  { %v1657_v37 = vpop.permute.xlu1 %1656  ;;  %v1546_v53 = vpop.permute.xlu0 %1545 }
0x1399   :  { %1511 = vxpose.xlu1.b32.start [1/2] (short) (narrow) %v1506_v33, 8 }
0x13a1   :  { %1512 = vxpose.xlu1.b32.end [2/2] (short) (narrow) %v1508_v34, 8 }
0x142d   :  { %v1635_v38 = vpop.trf.xlu1 }
0x142e   :  { %v1659_v41 = vperm.slane %v1635_v38, 0 }
0x1430   :  { %v1660_v42 = vadd.f32 %v1659_v41, %v1653_v39  ;;  %v1661_v43 = vadd.f32 %v1659_v41, %v1657_v37 }
0x1432   :  { %v1664_v44 = vmul.f32 0.2, %v1660_v42  ;;  %v1665_v45 = vmul.f32 0.2, %v1661_v43  ;;  %vm1663_vm10 = vcmp.gt.f32.partialorder %v1661_v43, 0.0  ;;  %vm1662_vm11 = vcmp.gt.f32.partialorder %v1660_v42, 0.0 }
0x1434   :  { %v1667_v46 = vsel %vm1663_vm10, %v1661_v43, %v1665_v45  ;;  %v1666_v40 = vsel %vm1662_vm11, %v1660_v42, %v1664_v44 }
0x1435   :  { %v1669_v47 = vadd.f32 %v1667_v46, %v2663_v55  ;;  %v1668_v48 = vadd.f32 %v1666_v40, %v2668_v5 }
0x1437   :  { %v1673_v49 = vsel %vm276_vm0, %v1669_v47, -inf  ;;  %v1670_v50 = vsel %vm276_vm0, %v1668_v48, -inf }
0x1438   :  { %1674 = vmax.xlane.f32.xlu2 %v1673_v49  ;;  %1671 = vmax.xlane.f32.xlu0 %v1670_v50 }
0x143d   :  { %v1527_v51 = vpop.trf.xlu1 }
0x143e   :  { %v1553_v52 = vperm.slane %v1527_v51, 0 }
0x1440   :  { %v1554_v54 = vadd.f32 %v1553_v52, %v1546_v53  ;;  %v1555_v56 = vadd.f32 %v1553_v52, %v1551_v32  ;;  %v1740_v32 = vld [vmem:[%s2909_s19 + $0x30] sm:$0xff]  ;;  %v1741_v53 = vld [vmem:[%s2909_s19 + $0x38] sm:$0xff] }
0x1442   :  { %v1558_v57 = vmul.f32 0.2, %v1554_v54  ;;  %vm1556_vm12 = vcmp.gt.f32.partialorder %v1554_v54, 0.0  ;;  %v1559_v58 = vmul.f32 0.2, %v1555_v56  ;;  %vm1557_vm13 = vcmp.gt.f32.partialorder %v1555_v56, 0.0 }
0x1444   :  { %v1560_v59 = vsel %vm1556_vm12, %v1554_v54, %v1558_v57  ;;  %v1561_v62 = vsel %vm1557_vm13, %v1555_v56, %v1559_v58  ;;  %v1738_v54 = vld [vmem:[%s2909_s19 + $0x20] sm:$0xff]  ;;  %v1745_v56 = vpack.c.bf16 %v1741_v53, %v1740_v32  ;;  %v1739_v57 = vld [vmem:[%s2909_s19 + $0x28] sm:$0xff] }
0x1445   :  { %v1562_v60 = vadd.f32 %v1560_v59, %v2668_v5  ;;  %v1563_v63 = vadd.f32 %v1561_v62, %v2663_v55  ;;  %v1744_v58 = vpack.c.bf16 %v1739_v57, %v1738_v54  ;;  %v1734_v62 = vld [vmem:[%s2909_s19] sm:$0xff] }
0x1446   :  { %1753 = vmatpush.bf16.msrb.mxu3 %v1745_v56 }
0x1447   :  { %v1564_v61 = vsel %vm276_vm0, %v1562_v60, -inf  ;;  %v1567_v0 = vsel %vm276_vm0, %v1563_v63, -inf }
0x1448   :  { %1565 = vmax.xlane.f32.xlu0 %v1564_v61  ;;  %v1737_v61 = vld [vmem:[%s2909_s19 + $0x18] sm:$0xff] }
0x144a   :  { %1754 = vmatpush.bf16.msrb.mxu3 %v1744_v58 }
0x1450   :  { %1568 = vmax.xlane.f32.xlu0 %v1567_v0  ;;  %v1735_v0 = vld [vmem:[%s2909_s19 + $0x8] sm:$0xff] }
0x1464   :  { %1698 = vrot.lane.b32.xlu0 %v1493_v31, %s2421_s16 }
0x146c   :  { %1701 = vrot.lane.b32.xlu0 %v1984_v23, %s2421_s16 }
0x14ab   :  { %v1675_v1 = vpop.xlane.xlu2 %1674  ;;  %v1672_v2 = vpop.xlane.xlu0 %1671 }
0x14ac   :  { %v1677_v3 = vsub.f32 %v1669_v47, %v1675_v1  ;;  %v1676_v4 = vsub.f32 %v1668_v48, %v1672_v2  ;;  %v1985_v48 = vld [vmem:[%s2908_s18] ss:$0 sm:$0xff]  ;;  %v1742_v1 = vpack.c.bf16 %v1735_v0, %v1734_v62 }
0x14ae   :  { %v1680_v6 = vmul.f32 1.442695, %v1677_v3  ;;  %v1678_v7 = vmul.f32 1.442695, %v1676_v4 }
0x14b0   :  { %2051 = vpow2.f32 %v1680_v6 }
0x14b1   :  { %2053 = vpow2.f32 %v1678_v7  ;;  %v1766_v7 = vld [vmem:[#allocation21 + $0x10] sm:$0xff] }
0x14b6   :  { %v2052_v8 = vpop.eup %2051 }
0x14b7   :  { %v2054_v9 = vpop.eup %2053  ;;  %v1685_v10 = vsel %vm276_vm0, %v2052_v8, 0.0 }
0x14b8   :  { %1686 = vadd.xlane.f32.xlu2 %v1685_v10  ;;  %v1682_v11 = vsel %vm276_vm0, %v2054_v9, 0.0  ;;  %v1764_v10 = vld [vmem:[#allocation21] sm:$0xff] }
0x14b9   :  { %1683 = vadd.xlane.f32.xlu1 %v1682_v11  ;;  %v1765_v11 = vld [vmem:[#allocation21 + $0x8] sm:$0xff] }
0x14bb   :  { %v1566_v12 = vpop.xlane.xlu0 %1565 }
0x14bc   :  { %v1570_v13 = vsub.f32 %v1562_v60, %v1566_v12  ;;  %v1736_v60 = vld [vmem:[%s2909_s19 + $0x10] sm:$0xff]  ;;  %v1768_v12 = vpack.c.bf16 %v1765_v11, %v1764_v10 }
0x14be   :  { %v1572_v14 = vmul.f32 1.442695, %v1570_v13 }
0x14c0   :  { %2055 = vpow2.f32 %v1572_v14 }
0x14c3   :  { %v1569_v15 = vpop.xlane.xlu0 %1568 }
0x14c4   :  { %v1571_v16 = vsub.f32 %v1563_v63, %v1569_v15  ;;  %v1743_v63 = vpack.c.bf16 %v1737_v61, %v1736_v60 }
0x14c6   :  { %v2056_v17 = vpop.eup %2055  ;;  %v1574_v18 = vmul.f32 1.442695, %v1571_v16  ;;  %1755 = vmatpush.bf16.msrb.mxu3 %v1743_v63 }
0x14c7   :  { %v1576_v19 = vsel %vm276_vm0, %v2056_v17, 0.0 }
0x14c8   :  { %2057 = vpow2.f32 %v1574_v18  ;;  %1577 = vadd.xlane.f32.xlu2 %v1576_v19 }
0x14ca   :  { %1756 = vmatpush.bf16.msrb.mxu3 %v1742_v1 }
0x14ce   :  { %v2058_v20 = vpop.eup %2057 }
0x14cf   :  { %v1579_v21 = vsel %vm276_vm0, %v2058_v20, 0.0 }
0x14d0   :  { %1580 = vadd.xlane.f32.xlu2 %v1579_v21 }
0x14d6   :  { %v1699_v22 = vpop.permute.xlu0 %1698 }
0x14d7   :  { %1714 = vmatpush.bf16.msrb.mxu0 %v1699_v22 }
0x14de   :  { %v1702_v44 = vpop.permute.xlu0 %1701 }
0x152b   :  { %v1687_v24 = vpop.xlane.xlu2 %1686 }
0x152c   :  { %v1689_v25 = vmax.f32 %v1687_v24, 1e-20  ;;  %v1684_v26 = vpop.xlane.xlu1 %1683 }
0x152d   :  { %v1688_v27 = vmax.f32 %v1684_v26, 1e-20 }
0x152e   :  { %2059 = vrcp.f32 %v1689_v25 }
0x152f   :  { %2061 = vrcp.f32 %v1688_v27 }
0x1534   :  { %v2060_v28 = vpop.eup %2059 }
0x1535   :  { %v2062_v29 = vpop.eup %2061  ;;  %v1693_v30 = vmul.f32 %v2060_v28, %v2052_v8  ;;  %v1767_v8 = vld [vmem:[#allocation21 + $0x18] sm:$0xff] }
0x1536   :  { %v1692_v31 = vmul.f32 %v2062_v29, %v2054_v9  ;;  %v1769_v9 = vpack.c.bf16 %v1767_v8, %v1766_v7 }
0x1538   :  { %v1694_v33 = vpack.c.bf16 %v1693_v30, %v1692_v31  ;;  %1779 = vmatpush.bf16.msrb.mxu1 %v1769_v9 }
0x153a   :  { %1933 = vmatmul.msk.bf16.vlgmr.msrb.gmra.mxu0 %vm276_vm0, %v1694_v33 }
0x153b   :  { %v1578_v34 = vpop.xlane.xlu2 %1577 }
0x153c   :  { %v1582_v35 = vmax.f32 %v1578_v34, 1e-20  ;;  %1780 = vmatpush.bf16.msrb.mxu1 %v1768_v12 }
0x153e   :  { %2063 = vrcp.f32 %v1582_v35 }
0x1543   :  { %v1581_v36 = vpop.xlane.xlu2 %1580 }
0x1544   :  { %v1583_v37 = vmax.f32 %v1581_v36, 1e-20  ;;  %v2064_v38 = vpop.eup %2063 }
0x1545   :  { %v1586_v39 = vmul.f32 %v2064_v38, %v2056_v17 }
0x1546   :  { %2065 = vrcp.f32 %v1583_v37 }
0x154c   :  { %v2066_v41 = vpop.eup %2065 }
0x154d   :  { %v1587_v42 = vmul.f32 %v2066_v41, %v2058_v20 }
0x154f   :  { %v1588_v43 = vpack.c.bf16 %v1587_v42, %v1586_v39 }
0x1551   :  { %1932 = vmatmul.msk.bf16.vlgmr.msra.gmra.mxu2 %vm276_vm0, %v1588_v43 }
0x15b7   :  { %v1716_v45 = vpop.f32.mrf.mxu0 }
0x15b8   :  { %v1717_v46 = vadd.f32 %v1716_v45, %v1702_v44 }
0x15ba   :  { %1723 = vrot.lane.b32.xlu2 %v1717_v46, %s2422_s23 }
0x15bf   :  { %v1718_v40 = vpop.f32.mrf.mxu0 }
0x15c0   :  { %v1719_v47 = vadd.f32 %v1718_v40, %v1702_v44 }
0x15c2   :  { %1725 = vrot.lane.b32.xlu0 %v1719_v47, %s2422_s23 }
0x15d4   :  { %v1606_v49 = vpop.f32.mrf.mxu2 }
0x15d5   :  { %v1607_v50 = vadd.f32 %v1985_v48, %v1606_v49 }
0x15d7   :  { %1611 = vst.msk [vmem:[#allocation2] sm:$0xff] %vm303_vm1, %v1607_v50  ;;  %v1986_v50 = vld [vmem:[%s2911_s21] ss:$0 sm:$0xff] }
0x15dc   :  { %v1608_v51 = vpop.f32.mrf.mxu2 }
0x15dd   :  { %v1609_v52 = vadd.f32 %v1985_v48, %v1608_v51 }
0x15df   :  { %1612 = vst.msk [vmem:[#allocation2 + $0x8] sm:$0xff] %vm303_vm1, %v1609_v52 }
0x1614   :  { %v1724_v59 = vpop.permute.xlu2 %1723 }
0x1615   :  { %1729 = vst.msk [vmem:[#allocation2] sm:$0xff] %vm576_vm9, %v1724_v59 }
0x161c   :  { %v1731_v3 = vld [vmem:[#allocation2] sm:$0xff] }
0x1634   :  { %v1726_v2 = vpop.permute.xlu0 %1725 }
0x1635   :  { %1730 = vst.msk [vmem:[#allocation2 + $0x8] sm:$0xff] %vm576_vm9, %v1726_v2 }
0x163c   :  { %v1732_v4 = vld [vmem:[#allocation2 + $0x8] sm:$0xff] }
0x163d   :  { %v1733_v6 = vpack.c.bf16 %v1732_v4, %v1731_v3 }
0x163f   :  { %1934 = vmatmul.msk.bf16.vlgmr.msrb.gmra.mxu3 %vm340_vm2, %v1733_v6 }
0x16c2   :  { %v1758_v13 = vpop.f32.mrf.mxu3 }
0x16ca   :  { %v1760_v14 = vpop.f32.mrf.mxu3 }
0x16cb   :  { %v1763_v15 = vpack.c.bf16 %v1760_v14, %v1758_v13 }
0x16cd   :  { %1935 = vmatmul.msk.bf16.vlgmr.msrb.gmra.mxu1 %vm303_vm1, %v1763_v15  ;;  %1879 = vmatpush.bf16.msrb.mxu2 %v1763_v15 }
0x174a   :  { %v1782_v16 = vpop.f32.mrf.mxu1 }
0x174b   :  { %1787 = vxpose.xlu2.b32.start [1/2] (short) (narrow) %v1782_v16, 8  ;;  %1821 = vperm.xlu0 %1973, %v1782_v16  }
0x1752   :  { %v1784_v17 = vpop.f32.mrf.mxu1 }
0x1753   :  { %1788 = vxpose.xlu2.b32.end [2/2] (short) (narrow) %v1784_v17, 8  ;;  %1826 = vperm.xlu0 %1973, %v1784_v17  }
0x17bd   :  { %v1822_v18 = vpop.permute.xlu0 %1821 }
0x17c5   :  { %v1827_v21 = vpop.permute.xlu0 %1826 }
0x17e4   :  { %v1803_v19 = vpop.trf.xlu2 }
0x17e5   :  { %v1829_v20 = vperm.slane %v1803_v19, 0 }
0x17e7   :  { %v1830_v22 = vadd.f32 %v1829_v20, %v1822_v18  ;;  %v1831_v23 = vadd.f32 %v1829_v20, %v1827_v21 }
0x17e9   :  { %v1834_v24 = vmul.f32 0.2, %v1830_v22  ;;  %v1835_v25 = vmul.f32 0.2, %v1831_v23  ;;  %vm1832_vm2 = vcmp.gt.f32.partialorder %v1830_v22, 0.0  ;;  %vm1833_vm9 = vcmp.gt.f32.partialorder %v1831_v23, 0.0 }
0x17eb   :  { %v1836_v26 = vsel %vm1832_vm2, %v1830_v22, %v1834_v24  ;;  %v1837_v27 = vsel %vm1833_vm9, %v1831_v23, %v1835_v25 }
0x17ec   :  { %v1838_v28 = vadd.f32 %v1836_v26, %v2668_v5  ;;  %v1839_v29 = vadd.f32 %v1837_v27, %v2663_v55 }
0x17ee   :  { %v1840_v30 = vsel %vm276_vm0, %v1838_v28, -inf  ;;  %v1843_v31 = vsel %vm276_vm0, %v1839_v29, -inf }
0x17ef   :  { %1841 = vmax.xlane.f32.xlu0 %v1840_v30  ;;  %1844 = vmax.xlane.f32.xlu1 %v1843_v31 }
0x1862   :  { %v1845_v33 = vpop.xlane.xlu1 %1844  ;;  %v1842_v34 = vpop.xlane.xlu0 %1841 }
0x1863   :  { %v1847_v35 = vsub.f32 %v1839_v29, %v1845_v33  ;;  %v1846_v36 = vsub.f32 %v1838_v28, %v1842_v34 }
0x1865   :  { %v1850_v37 = vmul.f32 1.442695, %v1847_v35  ;;  %v1848_v38 = vmul.f32 1.442695, %v1846_v36 }
0x1867   :  { %2067 = vpow2.f32 %v1850_v37 }
0x1868   :  { %2069 = vpow2.f32 %v1848_v38 }
0x186d   :  { %v2068_v41 = vpop.eup %2067 }
0x186e   :  { %v2070_v39 = vpop.eup %2069  ;;  %v1855_v5 = vsel %vm276_vm0, %v2068_v41, 0.0 }
0x186f   :  { %1856 = vadd.xlane.f32.xlu0 %v1855_v5  ;;  %v1852_v55 = vsel %vm276_vm0, %v2070_v39, 0.0 }
0x1870   :  { %1853 = vadd.xlane.f32.xlu2 %v1852_v55 }
0x18e2   :  { %v1857_v42 = vpop.xlane.xlu0 %1856 }
0x18e3   :  { %v1854_v43 = vpop.xlane.xlu2 %1853  ;;  %v1859_v44 = vmax.f32 %v1857_v42, 1e-20 }
0x18e4   :  { %v1858_v45 = vmax.f32 %v1854_v43, 1e-20 }
0x18e5   :  { %2071 = vrcp.f32 %v1859_v44 }
0x18e6   :  { %2073 = vrcp.f32 %v1858_v45 }
0x18eb   :  { %v2072_v46 = vpop.eup %2071 }
0x18ec   :  { %v2074_v40 = vpop.eup %2073  ;;  %v1863_v47 = vmul.f32 %v2072_v46, %v2068_v41 }
0x18ed   :  { %v1862_v48 = vmul.f32 %v2074_v40, %v2070_v39 }
0x18ef   :  { %v1864_v49 = vpack.c.bf16 %v1863_v47, %v1862_v48 }
0x18f1   :  { %1936 = vmatmul.msk.bf16.vlgmr.msrb.gmra.mxu2 %vm276_vm0, %v1864_v49 }
0x1974   :  { %v1881_v51 = vpop.f32.mrf.mxu2 }
0x1975   :  { %v1882_v52 = vadd.f32 %v1986_v50, %v1881_v51 }
0x1977   :  { %1886 = vst.msk [vmem:[#allocation23] sm:$0xff] %vm303_vm1, %v1882_v52 }
0x197c   :  { %v1883_v32 = vpop.f32.mrf.mxu2 }
0x197d   :  { %v1884_v53 = vadd.f32 %v1986_v50, %v1883_v32 }
0x197f   :  { %1887 = vst.msk [vmem:[#allocation23 + $0x8] sm:$0xff] %vm303_vm1, %v1884_v53 }
0x1980   :  { %1900 = dma.vmem_to_hbm [thread:$0]  %s1893_s12, 256, %s1895_s26, [#allocation5], %s2404_s24, %s2404_s24, %s2405_s6  }
0x1981   :  { %2401 = dma.done.wait [#allocation5], 256  }
0x1982   :  { %2402 = vsyncadd [#allocation5], 4294967040 }
0x1983   :  { %1905 = vsyncpa [#allocation4], 1 }
0x1984   :  { %1906 = vsyncpa [#allocation7], 1 }
0x1985   :  { %1907 = vsyncpa [#allocation10], 1 }
0x1986   :  { %1908 = vsyncpa [#allocation13], 1 }
0x1987   :  { %1909 = vsyncpa [#allocation16], 1 }
0x1988   :  { %1910 = vsyncpa [#allocation19], 1 }
0x1989   :  { %1911 = vsyncpa [#allocation22], 1 }
0x198a   :  { %1912 = vsyncpa [#allocation5], 1 }

</bundles_post_ra>
